<compile_context>
chip_gen: v7x
topology: tpu7x:2x2x1
jax: 0.10.0
libtpu: 0.0.40
codegen_flags: <defaults>
</compile_context>

<pallas_src>
import math
from functools import partial

import jax
import jax.numpy as jnp
from jax import lax
from jax.experimental import pallas as pl
from jax.experimental.pallas import tpu as pltpu

_EPS = 1e-5  # PyTorch nn.LayerNorm default eps
_SQRT_2_OVER_PI = math.sqrt(2.0 / math.pi)


# ----------------------------------------------------------------------------
# shared math helpers
# ----------------------------------------------------------------------------
def _layernorm(h, gamma, beta):
    mu = jnp.mean(h, axis=-1, keepdims=True)
    var = jnp.mean((h - mu) ** 2, axis=-1, keepdims=True)
    return (h - mu) * lax.rsqrt(var + _EPS) * gamma + beta


def _gelu_tanh(x):
    # tanh-approx GELU: jnp.tanh lowers to the EUP, keeping the VALU free.
    # |err| vs exact erf-GELU < ~1e-3 (far below the test tolerance).
    return 0.5 * x * (1.0 + jnp.tanh(_SQRT_2_OVER_PI *
                                     (x + 0.044715 * x * x * x)))


# ----------------------------------------------------------------------------
# fused ViT kernel: patch-embed prologue, num_layers transformer blocks,
# norm+head epilogue.  Grid = (num_layers,), residual carried in VMEM scratch.
# ----------------------------------------------------------------------------
def _vit_fused_kernel(patches_ref, pw_ref, tok_ref,
                      g1_ref, be1_ref, wqkv_ref, bqkv_ref,
                      wproj_ref, bproj_ref, g2_ref, be2_ref,
                      w1_ref, bm1_ref, w2_ref, bm2_ref,
                      ng_ref, nb_ref, hw_ref, hb_ref,
                      o_ref, h_res,
                      *, batch, seq, num_heads, head_dim):
    layer = pl.program_id(0)
    dim = num_heads * head_dim
    bf16 = jnp.bfloat16

    # ---- prologue: patch embedding + cls + pos (layer 0 only) --------------
    # patches already contain a zero "cls patch" row per image; tok_ref holds
    # (cls + pos[0]) for that row and (patch_bias + pos[1:]) for the rest.
    @pl.when(layer == 0)
    def _():
        h_res[...] = (jnp.dot(patches_ref[...], pw_ref[...],
                              preferred_element_type=jnp.float32)
                      + tok_ref[...])

    x = h_res[...]                                         # (B*L, D) float32

    # ---- attention branch ---------------------------------------------------
    h = _layernorm(x, g1_ref[0], be1_ref[0])
    # Q columns of wqkv/bqkv are pre-scaled by 1/sqrt(head_dim) in the wrapper.
    qkv = (jnp.dot(h.astype(bf16), wqkv_ref[0],
                   preferred_element_type=jnp.float32) + bqkv_ref[0])  # (B*L, 3D)

    wproj = wproj_ref[0]                                   # (D, D) bf16
    batch_outs = []
    for b in range(batch):                                 # static, tiny
        r0 = b * seq
        acc = jnp.zeros((seq, dim), jnp.float32)
        for n in range(num_heads):                         # static, tiny
            c0 = n * head_dim
            q = qkv[r0:r0 + seq, c0:c0 + head_dim].astype(bf16)
            k = qkv[r0:r0 + seq, dim + c0:dim + c0 + head_dim].astype(bf16)
            v = qkv[r0:r0 + seq, 2 * dim + c0:2 * dim + c0 + head_dim].astype(bf16)
            # scores = (q * scale) @ k^T   (scale already folded into q)
            s = lax.dot_general(q, k, (((1,), (1,)), ((), ())),
                                preferred_element_type=jnp.float32)   # (L, L)
            s = s - jnp.max(s, axis=-1, keepdims=True)
            e = jnp.exp(s)
            p = e * pl.reciprocal(jnp.sum(e, axis=-1, keepdims=True),
                                  approx=True)
            o_bn = jnp.dot(p.astype(bf16), v,
                           preferred_element_type=jnp.float32)        # (L, hd)
            # fold the head concat into the proj matmul (row block of wproj)
            acc = acc + jnp.dot(o_bn.astype(bf16),
                                wproj[c0:c0 + head_dim, :],
                                preferred_element_type=jnp.float32)
        batch_outs.append(acc)
    attn = batch_outs[0] if batch == 1 else jnp.concatenate(batch_outs, axis=0)
    x1 = x + attn + bproj_ref[0]

    # ---- MLP branch ---------------------------------------------------------
    h2 = _layernorm(x1, g2_ref[0], be2_ref[0])
    m = (jnp.dot(h2.astype(bf16), w1_ref[0],
                 preferred_element_type=jnp.float32) + bm1_ref[0])
    m = _gelu_tanh(m)
    m = (jnp.dot(m.astype(bf16), w2_ref[0],
                 preferred_element_type=jnp.float32) + bm2_ref[0])
    h_res[...] = x1 + m

    # ---- epilogue: final LayerNorm + lane-dense (128-padded) head ----------
    @pl.when(layer == pl.num_programs(0) - 1)
    def _():
        hn = _layernorm(h_res[...], ng_ref[...], nb_ref[...])
        o_ref[...] = (jnp.dot(hn.astype(bf16), hw_ref[...],
                              preferred_element_type=jnp.float32)
                      + hb_ref[...])


def _const_spec(shape):
    nd = len(shape)
    return pl.BlockSpec(shape, lambda l, nd=nd: (0,) * nd)


def _layer_spec(shape):
    nd = len(shape)
    return pl.BlockSpec((1,) + shape, lambda l, nd=nd: (l,) + (0,) * nd)


# ----------------------------------------------------------------------------
# parameters + forward
# ----------------------------------------------------------------------------
def init_vit_params(key, *, image_size, patch_size, dim, out_dim, num_heads,
                    num_layers):
    del num_heads
    num_patches = (image_size // patch_size) ** 2
    kpatch = 3 * patch_size * patch_size

    def nrm(k, shape, std=0.02):
        return std * jax.random.normal(k, shape, jnp.float32)

    keys = jax.random.split(key, 4 + num_layers)
    params = {
        # conv weight (dim, 3, p, p) reshaped/transposed to (3*p*p, dim)
        "patch_w": nrm(keys[0], (kpatch, dim)),
        "patch_b": jnp.zeros((1, dim), jnp.float32),
        "cls": jnp.zeros((1, 1, dim), jnp.float32),           # torch.zeros
        "pos": nrm(keys[1], (1, num_patches + 1, dim)),        # normal(std=.02)
        "head_w": nrm(keys[2], (dim, out_dim)),
        "head_b": jnp.zeros((1, out_dim), jnp.float32),
        "norm_g": jnp.ones((1, dim), jnp.float32),
        "norm_b": jnp.zeros((1, dim), jnp.float32),
        "blocks": [],
    }
    for i in range(num_layers):
        bk = jax.random.split(keys[4 + i], 4)
        params["blocks"].append({
            "g1": jnp.ones((1, dim), jnp.float32),
            "be1": jnp.zeros((1, dim), jnp.float32),
            "wqkv": nrm(bk[0], (dim, 3 * dim)),
            "bqkv": jnp.zeros((1, 3 * dim), jnp.float32),
            "wproj": nrm(bk[1], (dim, dim)),
            "bproj": jnp.zeros((1, dim), jnp.float32),
            "g2": jnp.ones((1, dim), jnp.float32),
            "be2": jnp.zeros((1, dim), jnp.float32),
            "w1": nrm(bk[2], (dim, 4 * dim)),
            "bm1": jnp.zeros((1, 4 * dim), jnp.float32),
            "w2": nrm(bk[3], (4 * dim, dim)),
            "bm2": jnp.zeros((1, dim), jnp.float32),
        })
    return params


def _extract_patches(x, patch_size):
    # NCHW -> (B, num_patches, C*p*p); flatten order (c, ph, pw) matches the
    # PyTorch Conv2d(3, dim, k=p, s=p) weight layout; patch order is row-major
    # over the (H/p, W/p) grid exactly like `.flatten(2).permute(0, 2, 1)`.
    b, c, hh, ww = x.shape
    p = patch_size
    gh, gw = hh // p, ww // p
    patches = x.reshape(b, c, gh, p, gw, p).transpose(0, 2, 4, 1, 3, 5)
    return patches.reshape(b, gh * gw, c * p * p)


def vit_forward_pallas(params, x, *, patch_size, dim, num_heads, out_dim):
    bf16 = jnp.bfloat16
    b = x.shape[0]
    head_dim = dim // num_heads
    scale = 1.0 / math.sqrt(head_dim)
    nl = len(params["blocks"])

    patches = _extract_patches(x, patch_size)               # (B, P, 3*p*p)
    num_p, kp = patches.shape[1], patches.shape[2]
    seq = num_p + 1
    bl = b * seq

    # Prepend a zero "cls patch" so one matmul covers all tokens; the additive
    # term carries cls+pos for row 0 and patch_bias+pos for the patch rows.
    patches_ext = jnp.concatenate(
        [jnp.zeros((b, 1, kp), jnp.float32), patches], axis=1)
    patches_flat = patches_ext.reshape(bl, kp).astype(bf16)
    tok = jnp.concatenate([params["cls"][0] + params["pos"][0, :1],
                           params["patch_b"] + params["pos"][0, 1:]], axis=0)
    tok_add = jnp.tile(tok, (b, 1))                         # (B*L, D) f32

    def stackp(name):
        return jnp.stack([bp[name] for bp in params["blocks"]], axis=0)

    g1, be1 = stackp("g1"), stackp("be1")                   # (nl, 1, D)
    g2, be2 = stackp("g2"), stackp("be2")
    # fold 1/sqrt(head_dim) into the Q columns of the QKV projection
    wqkv = stackp("wqkv").at[:, :, :dim].multiply(scale).astype(bf16)
    bqkv = stackp("bqkv").at[:, :, :dim].multiply(scale)
    wproj, bproj = stackp("wproj").astype(bf16), stackp("bproj")
    w1, bm1 = stackp("w1").astype(bf16), stackp("bm1")
    w2, bm2 = stackp("w2").astype(bf16), stackp("bm2")
    mlp = w1.shape[-1]

    # lane-dense head: pad output columns to a multiple of 128
    out_pad = max(128, ((out_dim + 127) // 128) * 128)
    head_w = (jnp.zeros((dim, out_pad), jnp.float32)
              .at[:, :out_dim].set(params["head_w"]).astype(bf16))
    head_b = (jnp.zeros((1, out_pad), jnp.float32)
              .at[:, :out_dim].set(params["head_b"]))

    in_specs = [
        _const_spec((bl, kp)),            # patches (bf16)
        _const_spec((kp, dim)),           # patch_w (bf16)
        _const_spec((bl, dim)),           # tok_add (f32)
        _layer_spec((1, dim)),            # g1
        _layer_spec((1, dim)),            # be1
        _layer_spec((dim, 3 * dim)),      # wqkv (bf16)
        _layer_spec((1, 3 * dim)),        # bqkv
        _layer_spec((dim, dim)),          # wproj (bf16)
        _layer_spec((1, dim)),            # bproj
        _layer_spec((1, dim)),            # g2
        _layer_spec((1, dim)),            # be2
        _layer_spec((dim, mlp)),          # w1 (bf16)
        _layer_spec((1, mlp)),            # bm1
        _layer_spec((mlp, dim)),          # w2 (bf16)
        _layer_spec((1, dim)),            # bm2
        _const_spec((1, dim)),            # norm_g
        _const_spec((1, dim)),            # norm_b
        _const_spec((dim, out_pad)),      # head_w (bf16)
        _const_spec((1, out_pad)),        # head_b
    ]

    kernel = partial(_vit_fused_kernel, batch=b, seq=seq,
                     num_heads=num_heads, head_dim=head_dim)
    out_flat = pl.pallas_call(
        kernel,
        out_shape=jax.ShapeDtypeStruct((bl, out_pad), jnp.float32),
        grid=(nl,),
        in_specs=in_specs,
        out_specs=_const_spec((bl, out_pad)),
        scratch_shapes=[pltpu.VMEM((bl, dim), jnp.float32)],   # residual stream
        compiler_params=pltpu.CompilerParams(
            dimension_semantics=("arbitrary",)),
    )(patches_flat, params["patch_w"].astype(bf16), tok_add,
      g1, be1, wqkv, bqkv, wproj, bproj, g2, be2, w1, bm1, w2, bm2,
      params["norm_g"], params["norm_b"], head_w, head_b)

    return out_flat[:, :out_dim].reshape(b, seq, out_dim)


# ----------------------------------------------------------------------------
# pure-JAX f32 reference (mirrors the PyTorch forward, exact erf GELU)
# ----------------------------------------------------------------------------
def vit_forward_ref(params, x, *, patch_size, dim, num_heads, out_dim):
    del out_dim
    b = x.shape[0]
    patches = _extract_patches(x, patch_size)
    emb = patches @ params["patch_w"] + params["patch_b"]
    cls = jnp.broadcast_to(params["cls"], (b, 1, dim))
    h = jnp.concatenate([cls, emb], axis=1) + params["pos"]
    head_dim = dim // num_heads
    scale = 1.0 / math.sqrt(head_dim)
    for bp in params["blocks"]:
        hn = _layernorm(h, bp["g1"], bp["be1"])
        qkv = hn @ bp["wqkv"] + bp["bqkv"]
        l = h.shape[1]
        qkv = qkv.reshape(b, l, 3, num_heads, head_dim)
        q, k, v = qkv[:, :, 0], qkv[:, :, 1], qkv[:, :, 2]
        s = scale * jnp.einsum("bind,bjnd->bnij", q, k)
        a = jax.nn.softmax(s, axis=-1)
        ao = jnp.einsum("bnij,bjnd->bind", a, v).reshape(b, l, dim)
        h = h + (ao @ bp["wproj"] + bp["bproj"])
        hn = _layernorm(h, bp["g2"], bp["be2"])
        m = jax.nn.gelu(hn @ bp["w1"] + bp["bm1"], approximate=False)
        h = h + (m @ bp["w2"] + bp["bm2"])
    hn = _layernorm(h, params["norm_g"], params["norm_b"])
    return hn @ params["head_w"] + params["head_b"]


if __name__ == "__main__":
    cfg = dict(image_size=32, patch_size=16, dim=64, out_dim=16,
               num_heads=4, num_layers=2)
    key = jax.random.PRNGKey(0)
    pkey, xkey = jax.random.split(key)
    params = init_vit_params(pkey, **cfg)
    x = jax.random.normal(
        xkey, (2, 3, cfg["image_size"], cfg["image_size"]), jnp.float32)

    fwd = dict(patch_size=cfg["patch_size"], dim=cfg["dim"],
               num_heads=cfg["num_heads"], out_dim=cfg["out_dim"])
    fwd_fn = jax.jit(partial(vit_forward_pallas, **fwd))
    out = jax.block_until_ready(fwd_fn(params, x))

    num_tokens = (cfg["image_size"] // cfg["patch_size"]) ** 2 + 1
    assert out.shape == (2, num_tokens, cfg["out_dim"]), out.shape
    assert bool(jnp.all(jnp.isfinite(out)))

    ref = vit_forward_ref(params, x, **fwd)
    max_err = float(jnp.max(jnp.abs(out - ref)))
    # bf16 matmuls + tanh GELU + approx-reciprocal softmax vs f32/erf reference
    assert jnp.allclose(out, ref, atol=2e-2, rtol=2e-2), max_err

    print("KERNEL_OK")
</pallas_src>

<mosaic_0001>
module attributes {stable_mosaic.version = 11 : i64} {
  func.func @_vit_fused_kernel(%arg0: i32, %arg1: memref<10x768xbf16, #tpu.memory_space<vmem>>, %arg2: memref<768x64xbf16, #tpu.memory_space<vmem>>, %arg3: memref<10x64xf32, #tpu.memory_space<vmem>>, %arg4: memref<1x1x64xf32, #tpu.memory_space<vmem>>, %arg5: memref<1x1x64xf32, #tpu.memory_space<vmem>>, %arg6: memref<1x64x192xbf16, #tpu.memory_space<vmem>>, %arg7: memref<1x1x192xf32, #tpu.memory_space<vmem>>, %arg8: memref<1x64x64xbf16, #tpu.memory_space<vmem>>, %arg9: memref<1x1x64xf32, #tpu.memory_space<vmem>>, %arg10: memref<1x1x64xf32, #tpu.memory_space<vmem>>, %arg11: memref<1x1x64xf32, #tpu.memory_space<vmem>>, %arg12: memref<1x64x256xbf16, #tpu.memory_space<vmem>>, %arg13: memref<1x1x256xf32, #tpu.memory_space<vmem>>, %arg14: memref<1x256x64xbf16, #tpu.memory_space<vmem>>, %arg15: memref<1x1x64xf32, #tpu.memory_space<vmem>>, %arg16: memref<1x64xf32, #tpu.memory_space<vmem>>, %arg17: memref<1x64xf32, #tpu.memory_space<vmem>>, %arg18: memref<64x128xbf16, #tpu.memory_space<vmem>>, %arg19: memref<1x128xf32, #tpu.memory_space<vmem>>, %arg20: memref<10x128xf32, #tpu.memory_space<vmem>>, %arg21: memref<10x64xf32, #tpu.memory_space<vmem>>) attributes {dimension_semantics = [#tpu.dimension_semantics<arbitrary>], iteration_bounds = array<i64: 2>, scalar_prefetch = 0 : i64, scratch_operands = 1 : i64, tpu.core_type = #tpu.core_type<tc>, window_params = [{pipeline_mode = #tpu.pipeline_mode<synchronous>, transform_indices = @transform_0, window_bounds = array<i64: 10, 768>}, {pipeline_mode = #tpu.pipeline_mode<synchronous>, transform_indices = @transform_1, window_bounds = array<i64: 768, 64>}, {pipeline_mode = #tpu.pipeline_mode<synchronous>, transform_indices = @transform_2, window_bounds = array<i64: 10, 64>}, {transform_indices = @transform_3, window_bounds = array<i64: 1, 1, 64>}, {transform_indices = @transform_4, window_bounds = array<i64: 1, 1, 64>}, {transform_indices = @transform_5, window_bounds = array<i64: 1, 64, 192>}, {transform_indices = @transform_6, window_bounds = array<i64: 1, 1, 192>}, {transform_indices = @transform_7, window_bounds = array<i64: 1, 64, 64>}, {transform_indices = @transform_8, window_bounds = array<i64: 1, 1, 64>}, {transform_indices = @transform_9, window_bounds = array<i64: 1, 1, 64>}, {transform_indices = @transform_10, window_bounds = array<i64: 1, 1, 64>}, {transform_indices = @transform_11, window_bounds = array<i64: 1, 64, 256>}, {transform_indices = @transform_12, window_bounds = array<i64: 1, 1, 256>}, {transform_indices = @transform_13, window_bounds = array<i64: 1, 256, 64>}, {transform_indices = @transform_14, window_bounds = array<i64: 1, 1, 64>}, {pipeline_mode = #tpu.pipeline_mode<synchronous>, transform_indices = @transform_15, window_bounds = array<i64: 1, 64>}, {pipeline_mode = #tpu.pipeline_mode<synchronous>, transform_indices = @transform_16, window_bounds = array<i64: 1, 64>}, {pipeline_mode = #tpu.pipeline_mode<synchronous>, transform_indices = @transform_17, window_bounds = array<i64: 64, 128>}, {pipeline_mode = #tpu.pipeline_mode<synchronous>, transform_indices = @transform_18, window_bounds = array<i64: 1, 128>}, {pipeline_mode = #tpu.pipeline_mode<synchronous>, transform_indices = @transform_19, window_bounds = array<i64: 10, 128>}]} {
    %c0_i32 = arith.constant 0 : i32
    %0 = arith.cmpi eq, %arg0, %c0_i32 : i32
    %1 = arith.extui %0 : i1 to i32
    %c0_i32_0 = arith.constant 0 : i32
    %2 = arith.cmpi ne, %1, %c0_i32_0 : i32
    scf.if %2 {
      %c0_99 = arith.constant 0 : index
      %c0_100 = arith.constant 0 : index
      %292 = vector.load %arg1[%c0_99, %c0_100] : memref<10x768xbf16, #tpu.memory_space<vmem>>, vector<10x768xbf16>
      %c0_101 = arith.constant 0 : index
      %c0_102 = arith.constant 0 : index
      %293 = vector.load %arg2[%c0_101, %c0_102] : memref<768x64xbf16, #tpu.memory_space<vmem>>, vector<768x64xbf16>
      %cst_103 = arith.constant dense<0.000000e+00> : vector<10x64xf32>
      %294 = tpu.matmul %292, %293, %cst_103 {dimension_numbers = #tpu.dot_dimension_numbers<[1], [0], [0], [1], [0, 0, 1, 1], [], []>} : vector<10x768xbf16>, vector<768x64xbf16>, vector<10x64xf32> -> vector<10x64xf32>
      %c0_104 = arith.constant 0 : index
      %c0_105 = arith.constant 0 : index
      %295 = vector.load %arg3[%c0_104, %c0_105] : memref<10x64xf32, #tpu.memory_space<vmem>>, vector<10x64xf32>
      %296 = arith.addf %294, %295 : vector<10x64xf32>
      %c0_106 = arith.constant 0 : index
      %c0_107 = arith.constant 0 : index
      %297 = vector.load %arg21[%c0_106, %c0_107] : memref<10x64xf32, #tpu.memory_space<vmem>>, vector<10x64xf32>
      tpu.vector_store %arg21[%c0_106, %c0_107], %296 {strides = array<i32>} : memref<10x64xf32, #tpu.memory_space<vmem>>, vector<10x64xf32>,
    } else {
    }
    %c0 = arith.constant 0 : index
    %c0_1 = arith.constant 0 : index
    %3 = vector.load %arg21[%c0, %c0_1] : memref<10x64xf32, #tpu.memory_space<vmem>>, vector<10x64xf32>
    %c0_2 = arith.constant 0 : index
    %c0_3 = arith.constant 0 : index
    %c0_4 = arith.constant 0 : index
    %4 = vector.load %arg4[%c0_2, %c0_3, %c0_4] : memref<1x1x64xf32, #tpu.memory_space<vmem>>, vector<1x1x64xf32>
    %5 = vector.shape_cast %4 : vector<1x1x64xf32> to vector<1x64xf32>
    %c0_5 = arith.constant 0 : index
    %c0_6 = arith.constant 0 : index
    %c0_7 = arith.constant 0 : index
    %6 = vector.load %arg5[%c0_5, %c0_6, %c0_7] : memref<1x1x64xf32, #tpu.memory_space<vmem>>, vector<1x1x64xf32>
    %7 = vector.shape_cast %6 : vector<1x1x64xf32> to vector<1x64xf32>
    %cst = arith.constant dense<0.000000e+00> : vector<10xf32>
    %8 = vector.multi_reduction <add>, %3, %cst [1] : vector<10x64xf32> to vector<10xf32>
    %9 = vector.shape_cast %8 : vector<10xf32> to vector<10x1xf32>
    %cst_8 = arith.constant 6.400000e+01 : f32
    %10 = vector.broadcast %cst_8 : f32 to vector<10x1xf32>
    %11 = arith.divf %9, %10 : vector<10x1xf32>
    %12 = vector.broadcast %11 : vector<10x1xf32> to vector<10x64xf32>
    %13 = arith.subf %3, %12 : vector<10x64xf32>
    %14 = arith.mulf %13, %13 : vector<10x64xf32>
    %cst_9 = arith.constant dense<0.000000e+00> : vector<10xf32>
    %15 = vector.multi_reduction <add>, %14, %cst_9 [1] : vector<10x64xf32> to vector<10xf32>
    %16 = vector.shape_cast %15 : vector<10xf32> to vector<10x1xf32>
    %cst_10 = arith.constant 6.400000e+01 : f32
    %17 = vector.broadcast %cst_10 : f32 to vector<10x1xf32>
    %18 = arith.divf %16, %17 : vector<10x1xf32>
    %19 = vector.broadcast %11 : vector<10x1xf32> to vector<10x64xf32>
    %20 = arith.subf %3, %19 : vector<10x64xf32>
    %cst_11 = arith.constant 9.99999974E-6 : f32
    %21 = vector.broadcast %cst_11 : f32 to vector<10x1xf32>
    %22 = arith.addf %18, %21 : vector<10x1xf32>
    %23 = math.rsqrt %22 : vector<10x1xf32>
    %24 = vector.broadcast %23 : vector<10x1xf32> to vector<10x64xf32>
    %25 = arith.mulf %20, %24 : vector<10x64xf32>
    %26 = vector.broadcast %5 : vector<1x64xf32> to vector<10x64xf32>
    %27 = arith.mulf %25, %26 : vector<10x64xf32>
    %28 = vector.broadcast %7 : vector<1x64xf32> to vector<10x64xf32>
    %29 = arith.addf %27, %28 : vector<10x64xf32>
    %30 = arith.truncf %29 : vector<10x64xf32> to vector<10x64xbf16>
    %c0_12 = arith.constant 0 : index
    %c0_13 = arith.constant 0 : index
    %c0_14 = arith.constant 0 : index
    %31 = vector.load %arg6[%c0_12, %c0_13, %c0_14] : memref<1x64x192xbf16, #tpu.memory_space<vmem>>, vector<1x64x192xbf16>
    %32 = vector.shape_cast %31 : vector<1x64x192xbf16> to vector<64x192xbf16>
    %cst_15 = arith.constant dense<0.000000e+00> : vector<10x192xf32>
    %33 = tpu.matmul %30, %32, %cst_15 {dimension_numbers = #tpu.dot_dimension_numbers<[1], [0], [0], [1], [0, 0, 1, 1], [], []>} : vector<10x64xbf16>, vector<64x192xbf16>, vector<10x192xf32> -> vector<10x192xf32>
    %c0_16 = arith.constant 0 : index
    %c0_17 = arith.constant 0 : index
    %c0_18 = arith.constant 0 : index
    %34 = vector.load %arg7[%c0_16, %c0_17, %c0_18] : memref<1x1x192xf32, #tpu.memory_space<vmem>>, vector<1x1x192xf32>
    %35 = vector.shape_cast %34 : vector<1x1x192xf32> to vector<1x192xf32>
    %36 = vector.broadcast %35 : vector<1x192xf32> to vector<10x192xf32>
    %37 = arith.addf %33, %36 : vector<10x192xf32>
    %c0_19 = arith.constant 0 : index
    %c0_20 = arith.constant 0 : index
    %c0_21 = arith.constant 0 : index
    %38 = vector.load %arg8[%c0_19, %c0_20, %c0_21] : memref<1x64x64xbf16, #tpu.memory_space<vmem>>, vector<1x64x64xbf16>
    %39 = vector.shape_cast %38 : vector<1x64x64xbf16> to vector<64x64xbf16>
    %cst_22 = arith.constant 0.000000e+00 : f32
    %40 = vector.broadcast %cst_22 : f32 to vector<5x64xf32>
    %41 = vector.extract_strided_slice %37 {offsets = [0, 0], sizes = [5, 16], strides = [1, 1]} : vector<10x192xf32> to vector<5x16xf32>
    %42 = arith.truncf %41 : vector<5x16xf32> to vector<5x16xbf16>
    %43 = vector.extract_strided_slice %37 {offsets = [0, 64], sizes = [5, 16], strides = [1, 1]} : vector<10x192xf32> to vector<5x16xf32>
    %44 = arith.truncf %43 : vector<5x16xf32> to vector<5x16xbf16>
    %45 = vector.extract_strided_slice %37 {offsets = [0, 128], sizes = [5, 16], strides = [1, 1]} : vector<10x192xf32> to vector<5x16xf32>
    %46 = arith.truncf %45 : vector<5x16xf32> to vector<5x16xbf16>
    %cst_23 = arith.constant dense<0.000000e+00> : vector<5x5xf32>
    %47 = tpu.matmul %42, %44, %cst_23 {dimension_numbers = #tpu.dot_dimension_numbers<[1], [1], [0], [0], [0, 0, 1, 0], [], []>} : vector<5x16xbf16>, vector<5x16xbf16>, vector<5x5xf32> -> vector<5x5xf32>
    %cst_24 = arith.constant dense<0xFF800000> : vector<5xf32>
    %48 = vector.multi_reduction <maximumf>, %47, %cst_24 [1] : vector<5x5xf32> to vector<5xf32>
    %49 = vector.shape_cast %48 : vector<5xf32> to vector<5x1xf32>
    %50 = vector.broadcast %49 : vector<5x1xf32> to vector<5x5xf32>
    %51 = arith.subf %47, %50 : vector<5x5xf32>
    %52 = math.exp %51 : vector<5x5xf32>
    %cst_25 = arith.constant dense<0.000000e+00> : vector<5xf32>
    %53 = vector.multi_reduction <add>, %52, %cst_25 [1] : vector<5x5xf32> to vector<5xf32>
    %54 = vector.shape_cast %53 : vector<5xf32> to vector<5x1xf32>
    %55 = tpu.reciprocal %54 {approx = true} : vector<5x1xf32> -> vector<5x1xf32>
    %56 = vector.broadcast %55 : vector<5x1xf32> to vector<5x5xf32>
    %57 = arith.mulf %52, %56 : vector<5x5xf32>
    %58 = arith.truncf %57 : vector<5x5xf32> to vector<5x5xbf16>
    %cst_26 = arith.constant dense<0.000000e+00> : vector<5x16xf32>
    %59 = tpu.matmul %58, %46, %cst_26 {dimension_numbers = #tpu.dot_dimension_numbers<[1], [0], [0], [1], [0, 0, 1, 1], [], []>} : vector<5x5xbf16>, vector<5x16xbf16>, vector<5x16xf32> -> vector<5x16xf32>
    %60 = arith.truncf %59 : vector<5x16xf32> to vector<5x16xbf16>
    %61 = vector.extract_strided_slice %39 {offsets = [0, 0], sizes = [16, 64], strides = [1, 1]} : vector<64x64xbf16> to vector<16x64xbf16>
    %cst_27 = arith.constant dense<0.000000e+00> : vector<5x64xf32>
    %62 = tpu.matmul %60, %61, %cst_27 {dimension_numbers = #tpu.dot_dimension_numbers<[1], [0], [0], [1], [0, 0, 1, 1], [], []>} : vector<5x16xbf16>, vector<16x64xbf16>, vector<5x64xf32> -> vector<5x64xf32>
    %63 = arith.addf %40, %62 : vector<5x64xf32>
    %64 = vector.extract_strided_slice %37 {offsets = [0, 16], sizes = [5, 16], strides = [1, 1]} : vector<10x192xf32> to vector<5x16xf32>
    %65 = arith.truncf %64 : vector<5x16xf32> to vector<5x16xbf16>
    %66 = vector.extract_strided_slice %37 {offsets = [0, 80], sizes = [5, 16], strides = [1, 1]} : vector<10x192xf32> to vector<5x16xf32>
    %67 = arith.truncf %66 : vector<5x16xf32> to vector<5x16xbf16>
    %68 = vector.extract_strided_slice %37 {offsets = [0, 144], sizes = [5, 16], strides = [1, 1]} : vector<10x192xf32> to vector<5x16xf32>
    %69 = arith.truncf %68 : vector<5x16xf32> to vector<5x16xbf16>
    %cst_28 = arith.constant dense<0.000000e+00> : vector<5x5xf32>
    %70 = tpu.matmul %65, %67, %cst_28 {dimension_numbers = #tpu.dot_dimension_numbers<[1], [1], [0], [0], [0, 0, 1, 0], [], []>} : vector<5x16xbf16>, vector<5x16xbf16>, vector<5x5xf32> -> vector<5x5xf32>
    %cst_29 = arith.constant dense<0xFF800000> : vector<5xf32>
    %71 = vector.multi_reduction <maximumf>, %70, %cst_29 [1] : vector<5x5xf32> to vector<5xf32>
    %72 = vector.shape_cast %71 : vector<5xf32> to vector<5x1xf32>
    %73 = vector.broadcast %72 : vector<5x1xf32> to vector<5x5xf32>
    %74 = arith.subf %70, %73 : vector<5x5xf32>
    %75 = math.exp %74 : vector<5x5xf32>
    %cst_30 = arith.constant dense<0.000000e+00> : vector<5xf32>
    %76 = vector.multi_reduction <add>, %75, %cst_30 [1] : vector<5x5xf32> to vector<5xf32>
    %77 = vector.shape_cast %76 : vector<5xf32> to vector<5x1xf32>
    %78 = tpu.reciprocal %77 {approx = true} : vector<5x1xf32> -> vector<5x1xf32>
    %79 = vector.broadcast %78 : vector<5x1xf32> to vector<5x5xf32>
    %80 = arith.mulf %75, %79 : vector<5x5xf32>
    %81 = arith.truncf %80 : vector<5x5xf32> to vector<5x5xbf16>
    %cst_31 = arith.constant dense<0.000000e+00> : vector<5x16xf32>
    %82 = tpu.matmul %81, %69, %cst_31 {dimension_numbers = #tpu.dot_dimension_numbers<[1], [0], [0], [1], [0, 0, 1, 1], [], []>} : vector<5x5xbf16>, vector<5x16xbf16>, vector<5x16xf32> -> vector<5x16xf32>
    %83 = arith.truncf %82 : vector<5x16xf32> to vector<5x16xbf16>
    %84 = vector.extract_strided_slice %39 {offsets = [16, 0], sizes = [16, 64], strides = [1, 1]} : vector<64x64xbf16> to vector<16x64xbf16>
    %cst_32 = arith.constant dense<0.000000e+00> : vector<5x64xf32>
    %85 = tpu.matmul %83, %84, %cst_32 {dimension_numbers = #tpu.dot_dimension_numbers<[1], [0], [0], [1], [0, 0, 1, 1], [], []>} : vector<5x16xbf16>, vector<16x64xbf16>, vector<5x64xf32> -> vector<5x64xf32>
    %86 = arith.addf %63, %85 : vector<5x64xf32>
    %87 = vector.extract_strided_slice %37 {offsets = [0, 32], sizes = [5, 16], strides = [1, 1]} : vector<10x192xf32> to vector<5x16xf32>
    %88 = arith.truncf %87 : vector<5x16xf32> to vector<5x16xbf16>
    %89 = vector.extract_strided_slice %37 {offsets = [0, 96], sizes = [5, 16], strides = [1, 1]} : vector<10x192xf32> to vector<5x16xf32>
    %90 = arith.truncf %89 : vector<5x16xf32> to vector<5x16xbf16>
    %91 = vector.extract_strided_slice %37 {offsets = [0, 160], sizes = [5, 16], strides = [1, 1]} : vector<10x192xf32> to vector<5x16xf32>
    %92 = arith.truncf %91 : vector<5x16xf32> to vector<5x16xbf16>
    %cst_33 = arith.constant dense<0.000000e+00> : vector<5x5xf32>
    %93 = tpu.matmul %88, %90, %cst_33 {dimension_numbers = #tpu.dot_dimension_numbers<[1], [1], [0], [0], [0, 0, 1, 0], [], []>} : vector<5x16xbf16>, vector<5x16xbf16>, vector<5x5xf32> -> vector<5x5xf32>
    %cst_34 = arith.constant dense<0xFF800000> : vector<5xf32>
    %94 = vector.multi_reduction <maximumf>, %93, %cst_34 [1] : vector<5x5xf32> to vector<5xf32>
    %95 = vector.shape_cast %94 : vector<5xf32> to vector<5x1xf32>
    %96 = vector.broadcast %95 : vector<5x1xf32> to vector<5x5xf32>
    %97 = arith.subf %93, %96 : vector<5x5xf32>
    %98 = math.exp %97 : vector<5x5xf32>
    %cst_35 = arith.constant dense<0.000000e+00> : vector<5xf32>
    %99 = vector.multi_reduction <add>, %98, %cst_35 [1] : vector<5x5xf32> to vector<5xf32>
    %100 = vector.shape_cast %99 : vector<5xf32> to vector<5x1xf32>
    %101 = tpu.reciprocal %100 {approx = true} : vector<5x1xf32> -> vector<5x1xf32>
    %102 = vector.broadcast %101 : vector<5x1xf32> to vector<5x5xf32>
    %103 = arith.mulf %98, %102 : vector<5x5xf32>
    %104 = arith.truncf %103 : vector<5x5xf32> to vector<5x5xbf16>
    %cst_36 = arith.constant dense<0.000000e+00> : vector<5x16xf32>
    %105 = tpu.matmul %104, %92, %cst_36 {dimension_numbers = #tpu.dot_dimension_numbers<[1], [0], [0], [1], [0, 0, 1, 1], [], []>} : vector<5x5xbf16>, vector<5x16xbf16>, vector<5x16xf32> -> vector<5x16xf32>
    %106 = arith.truncf %105 : vector<5x16xf32> to vector<5x16xbf16>
    %107 = vector.extract_strided_slice %39 {offsets = [32, 0], sizes = [16, 64], strides = [1, 1]} : vector<64x64xbf16> to vector<16x64xbf16>
    %cst_37 = arith.constant dense<0.000000e+00> : vector<5x64xf32>
    %108 = tpu.matmul %106, %107, %cst_37 {dimension_numbers = #tpu.dot_dimension_numbers<[1], [0], [0], [1], [0, 0, 1, 1], [], []>} : vector<5x16xbf16>, vector<16x64xbf16>, vector<5x64xf32> -> vector<5x64xf32>
    %109 = arith.addf %86, %108 : vector<5x64xf32>
    %110 = vector.extract_strided_slice %37 {offsets = [0, 48], sizes = [5, 16], strides = [1, 1]} : vector<10x192xf32> to vector<5x16xf32>
    %111 = arith.truncf %110 : vector<5x16xf32> to vector<5x16xbf16>
    %112 = vector.extract_strided_slice %37 {offsets = [0, 112], sizes = [5, 16], strides = [1, 1]} : vector<10x192xf32> to vector<5x16xf32>
    %113 = arith.truncf %112 : vector<5x16xf32> to vector<5x16xbf16>
    %114 = vector.extract_strided_slice %37 {offsets = [0, 176], sizes = [5, 16], strides = [1, 1]} : vector<10x192xf32> to vector<5x16xf32>
    %115 = arith.truncf %114 : vector<5x16xf32> to vector<5x16xbf16>
    %cst_38 = arith.constant dense<0.000000e+00> : vector<5x5xf32>
    %116 = tpu.matmul %111, %113, %cst_38 {dimension_numbers = #tpu.dot_dimension_numbers<[1], [1], [0], [0], [0, 0, 1, 0], [], []>} : vector<5x16xbf16>, vector<5x16xbf16>, vector<5x5xf32> -> vector<5x5xf32>
    %cst_39 = arith.constant dense<0xFF800000> : vector<5xf32>
    %117 = vector.multi_reduction <maximumf>, %116, %cst_39 [1] : vector<5x5xf32> to vector<5xf32>
    %118 = vector.shape_cast %117 : vector<5xf32> to vector<5x1xf32>
    %119 = vector.broadcast %118 : vector<5x1xf32> to vector<5x5xf32>
    %120 = arith.subf %116, %119 : vector<5x5xf32>
    %121 = math.exp %120 : vector<5x5xf32>
    %cst_40 = arith.constant dense<0.000000e+00> : vector<5xf32>
    %122 = vector.multi_reduction <add>, %121, %cst_40 [1] : vector<5x5xf32> to vector<5xf32>
    %123 = vector.shape_cast %122 : vector<5xf32> to vector<5x1xf32>
    %124 = tpu.reciprocal %123 {approx = true} : vector<5x1xf32> -> vector<5x1xf32>
    %125 = vector.broadcast %124 : vector<5x1xf32> to vector<5x5xf32>
    %126 = arith.mulf %121, %125 : vector<5x5xf32>
    %127 = arith.truncf %126 : vector<5x5xf32> to vector<5x5xbf16>
    %cst_41 = arith.constant dense<0.000000e+00> : vector<5x16xf32>
    %128 = tpu.matmul %127, %115, %cst_41 {dimension_numbers = #tpu.dot_dimension_numbers<[1], [0], [0], [1], [0, 0, 1, 1], [], []>} : vector<5x5xbf16>, vector<5x16xbf16>, vector<5x16xf32> -> vector<5x16xf32>
    %129 = arith.truncf %128 : vector<5x16xf32> to vector<5x16xbf16>
    %130 = vector.extract_strided_slice %39 {offsets = [48, 0], sizes = [16, 64], strides = [1, 1]} : vector<64x64xbf16> to vector<16x64xbf16>
    %cst_42 = arith.constant dense<0.000000e+00> : vector<5x64xf32>
    %131 = tpu.matmul %129, %130, %cst_42 {dimension_numbers = #tpu.dot_dimension_numbers<[1], [0], [0], [1], [0, 0, 1, 1], [], []>} : vector<5x16xbf16>, vector<16x64xbf16>, vector<5x64xf32> -> vector<5x64xf32>
    %132 = arith.addf %109, %131 : vector<5x64xf32>
    %cst_43 = arith.constant 0.000000e+00 : f32
    %133 = vector.broadcast %cst_43 : f32 to vector<5x64xf32>
    %134 = vector.extract_strided_slice %37 {offsets = [5, 0], sizes = [5, 16], strides = [1, 1]} : vector<10x192xf32> to vector<5x16xf32>
    %135 = arith.truncf %134 : vector<5x16xf32> to vector<5x16xbf16>
    %136 = vector.extract_strided_slice %37 {offsets = [5, 64], sizes = [5, 16], strides = [1, 1]} : vector<10x192xf32> to vector<5x16xf32>
    %137 = arith.truncf %136 : vector<5x16xf32> to vector<5x16xbf16>
    %138 = vector.extract_strided_slice %37 {offsets = [5, 128], sizes = [5, 16], strides = [1, 1]} : vector<10x192xf32> to vector<5x16xf32>
    %139 = arith.truncf %138 : vector<5x16xf32> to vector<5x16xbf16>
    %cst_44 = arith.constant dense<0.000000e+00> : vector<5x5xf32>
    %140 = tpu.matmul %135, %137, %cst_44 {dimension_numbers = #tpu.dot_dimension_numbers<[1], [1], [0], [0], [0, 0, 1, 0], [], []>} : vector<5x16xbf16>, vector<5x16xbf16>, vector<5x5xf32> -> vector<5x5xf32>
    %cst_45 = arith.constant dense<0xFF800000> : vector<5xf32>
    %141 = vector.multi_reduction <maximumf>, %140, %cst_45 [1] : vector<5x5xf32> to vector<5xf32>
    %142 = vector.shape_cast %141 : vector<5xf32> to vector<5x1xf32>
    %143 = vector.broadcast %142 : vector<5x1xf32> to vector<5x5xf32>
    %144 = arith.subf %140, %143 : vector<5x5xf32>
    %145 = math.exp %144 : vector<5x5xf32>
    %cst_46 = arith.constant dense<0.000000e+00> : vector<5xf32>
    %146 = vector.multi_reduction <add>, %145, %cst_46 [1] : vector<5x5xf32> to vector<5xf32>
    %147 = vector.shape_cast %146 : vector<5xf32> to vector<5x1xf32>
    %148 = tpu.reciprocal %147 {approx = true} : vector<5x1xf32> -> vector<5x1xf32>
    %149 = vector.broadcast %148 : vector<5x1xf32> to vector<5x5xf32>
    %150 = arith.mulf %145, %149 : vector<5x5xf32>
    %151 = arith.truncf %150 : vector<5x5xf32> to vector<5x5xbf16>
    %cst_47 = arith.constant dense<0.000000e+00> : vector<5x16xf32>
    %152 = tpu.matmul %151, %139, %cst_47 {dimension_numbers = #tpu.dot_dimension_numbers<[1], [0], [0], [1], [0, 0, 1, 1], [], []>} : vector<5x5xbf16>, vector<5x16xbf16>, vector<5x16xf32> -> vector<5x16xf32>
    %153 = arith.truncf %152 : vector<5x16xf32> to vector<5x16xbf16>
    %154 = vector.extract_strided_slice %39 {offsets = [0, 0], sizes = [16, 64], strides = [1, 1]} : vector<64x64xbf16> to vector<16x64xbf16>
    %cst_48 = arith.constant dense<0.000000e+00> : vector<5x64xf32>
    %155 = tpu.matmul %153, %154, %cst_48 {dimension_numbers = #tpu.dot_dimension_numbers<[1], [0], [0], [1], [0, 0, 1, 1], [], []>} : vector<5x16xbf16>, vector<16x64xbf16>, vector<5x64xf32> -> vector<5x64xf32>
    %156 = arith.addf %133, %155 : vector<5x64xf32>
    %157 = vector.extract_strided_slice %37 {offsets = [5, 16], sizes = [5, 16], strides = [1, 1]} : vector<10x192xf32> to vector<5x16xf32>
    %158 = arith.truncf %157 : vector<5x16xf32> to vector<5x16xbf16>
    %159 = vector.extract_strided_slice %37 {offsets = [5, 80], sizes = [5, 16], strides = [1, 1]} : vector<10x192xf32> to vector<5x16xf32>
    %160 = arith.truncf %159 : vector<5x16xf32> to vector<5x16xbf16>
    %161 = vector.extract_strided_slice %37 {offsets = [5, 144], sizes = [5, 16], strides = [1, 1]} : vector<10x192xf32> to vector<5x16xf32>
    %162 = arith.truncf %161 : vector<5x16xf32> to vector<5x16xbf16>
    %cst_49 = arith.constant dense<0.000000e+00> : vector<5x5xf32>
    %163 = tpu.matmul %158, %160, %cst_49 {dimension_numbers = #tpu.dot_dimension_numbers<[1], [1], [0], [0], [0, 0, 1, 0], [], []>} : vector<5x16xbf16>, vector<5x16xbf16>, vector<5x5xf32> -> vector<5x5xf32>
    %cst_50 = arith.constant dense<0xFF800000> : vector<5xf32>
    %164 = vector.multi_reduction <maximumf>, %163, %cst_50 [1] : vector<5x5xf32> to vector<5xf32>
    %165 = vector.shape_cast %164 : vector<5xf32> to vector<5x1xf32>
    %166 = vector.broadcast %165 : vector<5x1xf32> to vector<5x5xf32>
    %167 = arith.subf %163, %166 : vector<5x5xf32>
    %168 = math.exp %167 : vector<5x5xf32>
    %cst_51 = arith.constant dense<0.000000e+00> : vector<5xf32>
    %169 = vector.multi_reduction <add>, %168, %cst_51 [1] : vector<5x5xf32> to vector<5xf32>
    %170 = vector.shape_cast %169 : vector<5xf32> to vector<5x1xf32>
    %171 = tpu.reciprocal %170 {approx = true} : vector<5x1xf32> -> vector<5x1xf32>
    %172 = vector.broadcast %171 : vector<5x1xf32> to vector<5x5xf32>
    %173 = arith.mulf %168, %172 : vector<5x5xf32>
    %174 = arith.truncf %173 : vector<5x5xf32> to vector<5x5xbf16>
    %cst_52 = arith.constant dense<0.000000e+00> : vector<5x16xf32>
    %175 = tpu.matmul %174, %162, %cst_52 {dimension_numbers = #tpu.dot_dimension_numbers<[1], [0], [0], [1], [0, 0, 1, 1], [], []>} : vector<5x5xbf16>, vector<5x16xbf16>, vector<5x16xf32> -> vector<5x16xf32>
    %176 = arith.truncf %175 : vector<5x16xf32> to vector<5x16xbf16>
    %177 = vector.extract_strided_slice %39 {offsets = [16, 0], sizes = [16, 64], strides = [1, 1]} : vector<64x64xbf16> to vector<16x64xbf16>
    %cst_53 = arith.constant dense<0.000000e+00> : vector<5x64xf32>
    %178 = tpu.matmul %176, %177, %cst_53 {dimension_numbers = #tpu.dot_dimension_numbers<[1], [0], [0], [1], [0, 0, 1, 1], [], []>} : vector<5x16xbf16>, vector<16x64xbf16>, vector<5x64xf32> -> vector<5x64xf32>
    %179 = arith.addf %156, %178 : vector<5x64xf32>
    %180 = vector.extract_strided_slice %37 {offsets = [5, 32], sizes = [5, 16], strides = [1, 1]} : vector<10x192xf32> to vector<5x16xf32>
    %181 = arith.truncf %180 : vector<5x16xf32> to vector<5x16xbf16>
    %182 = vector.extract_strided_slice %37 {offsets = [5, 96], sizes = [5, 16], strides = [1, 1]} : vector<10x192xf32> to vector<5x16xf32>
    %183 = arith.truncf %182 : vector<5x16xf32> to vector<5x16xbf16>
    %184 = vector.extract_strided_slice %37 {offsets = [5, 160], sizes = [5, 16], strides = [1, 1]} : vector<10x192xf32> to vector<5x16xf32>
    %185 = arith.truncf %184 : vector<5x16xf32> to vector<5x16xbf16>
    %cst_54 = arith.constant dense<0.000000e+00> : vector<5x5xf32>
    %186 = tpu.matmul %181, %183, %cst_54 {dimension_numbers = #tpu.dot_dimension_numbers<[1], [1], [0], [0], [0, 0, 1, 0], [], []>} : vector<5x16xbf16>, vector<5x16xbf16>, vector<5x5xf32> -> vector<5x5xf32>
    %cst_55 = arith.constant dense<0xFF800000> : vector<5xf32>
    %187 = vector.multi_reduction <maximumf>, %186, %cst_55 [1] : vector<5x5xf32> to vector<5xf32>
    %188 = vector.shape_cast %187 : vector<5xf32> to vector<5x1xf32>
    %189 = vector.broadcast %188 : vector<5x1xf32> to vector<5x5xf32>
    %190 = arith.subf %186, %189 : vector<5x5xf32>
    %191 = math.exp %190 : vector<5x5xf32>
    %cst_56 = arith.constant dense<0.000000e+00> : vector<5xf32>
    %192 = vector.multi_reduction <add>, %191, %cst_56 [1] : vector<5x5xf32> to vector<5xf32>
    %193 = vector.shape_cast %192 : vector<5xf32> to vector<5x1xf32>
    %194 = tpu.reciprocal %193 {approx = true} : vector<5x1xf32> -> vector<5x1xf32>
    %195 = vector.broadcast %194 : vector<5x1xf32> to vector<5x5xf32>
    %196 = arith.mulf %191, %195 : vector<5x5xf32>
    %197 = arith.truncf %196 : vector<5x5xf32> to vector<5x5xbf16>
    %cst_57 = arith.constant dense<0.000000e+00> : vector<5x16xf32>
    %198 = tpu.matmul %197, %185, %cst_57 {dimension_numbers = #tpu.dot_dimension_numbers<[1], [0], [0], [1], [0, 0, 1, 1], [], []>} : vector<5x5xbf16>, vector<5x16xbf16>, vector<5x16xf32> -> vector<5x16xf32>
    %199 = arith.truncf %198 : vector<5x16xf32> to vector<5x16xbf16>
    %200 = vector.extract_strided_slice %39 {offsets = [32, 0], sizes = [16, 64], strides = [1, 1]} : vector<64x64xbf16> to vector<16x64xbf16>
    %cst_58 = arith.constant dense<0.000000e+00> : vector<5x64xf32>
    %201 = tpu.matmul %199, %200, %cst_58 {dimension_numbers = #tpu.dot_dimension_numbers<[1], [0], [0], [1], [0, 0, 1, 1], [], []>} : vector<5x16xbf16>, vector<16x64xbf16>, vector<5x64xf32> -> vector<5x64xf32>
    %202 = arith.addf %179, %201 : vector<5x64xf32>
    %203 = vector.extract_strided_slice %37 {offsets = [5, 48], sizes = [5, 16], strides = [1, 1]} : vector<10x192xf32> to vector<5x16xf32>
    %204 = arith.truncf %203 : vector<5x16xf32> to vector<5x16xbf16>
    %205 = vector.extract_strided_slice %37 {offsets = [5, 112], sizes = [5, 16], strides = [1, 1]} : vector<10x192xf32> to vector<5x16xf32>
    %206 = arith.truncf %205 : vector<5x16xf32> to vector<5x16xbf16>
    %207 = vector.extract_strided_slice %37 {offsets = [5, 176], sizes = [5, 16], strides = [1, 1]} : vector<10x192xf32> to vector<5x16xf32>
    %208 = arith.truncf %207 : vector<5x16xf32> to vector<5x16xbf16>
    %cst_59 = arith.constant dense<0.000000e+00> : vector<5x5xf32>
    %209 = tpu.matmul %204, %206, %cst_59 {dimension_numbers = #tpu.dot_dimension_numbers<[1], [1], [0], [0], [0, 0, 1, 0], [], []>} : vector<5x16xbf16>, vector<5x16xbf16>, vector<5x5xf32> -> vector<5x5xf32>
    %cst_60 = arith.constant dense<0xFF800000> : vector<5xf32>
    %210 = vector.multi_reduction <maximumf>, %209, %cst_60 [1] : vector<5x5xf32> to vector<5xf32>
    %211 = vector.shape_cast %210 : vector<5xf32> to vector<5x1xf32>
    %212 = vector.broadcast %211 : vector<5x1xf32> to vector<5x5xf32>
    %213 = arith.subf %209, %212 : vector<5x5xf32>
    %214 = math.exp %213 : vector<5x5xf32>
    %cst_61 = arith.constant dense<0.000000e+00> : vector<5xf32>
    %215 = vector.multi_reduction <add>, %214, %cst_61 [1] : vector<5x5xf32> to vector<5xf32>
    %216 = vector.shape_cast %215 : vector<5xf32> to vector<5x1xf32>
    %217 = tpu.reciprocal %216 {approx = true} : vector<5x1xf32> -> vector<5x1xf32>
    %218 = vector.broadcast %217 : vector<5x1xf32> to vector<5x5xf32>
    %219 = arith.mulf %214, %218 : vector<5x5xf32>
    %220 = arith.truncf %219 : vector<5x5xf32> to vector<5x5xbf16>
    %cst_62 = arith.constant dense<0.000000e+00> : vector<5x16xf32>
    %221 = tpu.matmul %220, %208, %cst_62 {dimension_numbers = #tpu.dot_dimension_numbers<[1], [0], [0], [1], [0, 0, 1, 1], [], []>} : vector<5x5xbf16>, vector<5x16xbf16>, vector<5x16xf32> -> vector<5x16xf32>
    %222 = arith.truncf %221 : vector<5x16xf32> to vector<5x16xbf16>
    %223 = vector.extract_strided_slice %39 {offsets = [48, 0], sizes = [16, 64], strides = [1, 1]} : vector<64x64xbf16> to vector<16x64xbf16>
    %cst_63 = arith.constant dense<0.000000e+00> : vector<5x64xf32>
    %224 = tpu.matmul %222, %223, %cst_63 {dimension_numbers = #tpu.dot_dimension_numbers<[1], [0], [0], [1], [0, 0, 1, 1], [], []>} : vector<5x16xbf16>, vector<16x64xbf16>, vector<5x64xf32> -> vector<5x64xf32>
    %225 = arith.addf %202, %224 : vector<5x64xf32>
    %226 = tpu.concatenate %132, %225 in 0 : vector<5x64xf32>, vector<5x64xf32> -> vector<10x64xf32>
    %227 = arith.addf %3, %226 : vector<10x64xf32>
    %c0_64 = arith.constant 0 : index
    %c0_65 = arith.constant 0 : index
    %c0_66 = arith.constant 0 : index
    %228 = vector.load %arg9[%c0_64, %c0_65, %c0_66] : memref<1x1x64xf32, #tpu.memory_space<vmem>>, vector<1x1x64xf32>
    %229 = vector.shape_cast %228 : vector<1x1x64xf32> to vector<1x64xf32>
    %230 = vector.broadcast %229 : vector<1x64xf32> to vector<10x64xf32>
    %231 = arith.addf %227, %230 : vector<10x64xf32>
    %c0_67 = arith.constant 0 : index
    %c0_68 = arith.constant 0 : index
    %c0_69 = arith.constant 0 : index
    %232 = vector.load %arg10[%c0_67, %c0_68, %c0_69] : memref<1x1x64xf32, #tpu.memory_space<vmem>>, vector<1x1x64xf32>
    %233 = vector.shape_cast %232 : vector<1x1x64xf32> to vector<1x64xf32>
    %c0_70 = arith.constant 0 : index
    %c0_71 = arith.constant 0 : index
    %c0_72 = arith.constant 0 : index
    %234 = vector.load %arg11[%c0_70, %c0_71, %c0_72] : memref<1x1x64xf32, #tpu.memory_space<vmem>>, vector<1x1x64xf32>
    %235 = vector.shape_cast %234 : vector<1x1x64xf32> to vector<1x64xf32>
    %cst_73 = arith.constant dense<0.000000e+00> : vector<10xf32>
    %236 = vector.multi_reduction <add>, %231, %cst_73 [1] : vector<10x64xf32> to vector<10xf32>
    %237 = vector.shape_cast %236 : vector<10xf32> to vector<10x1xf32>
    %cst_74 = arith.constant 6.400000e+01 : f32
    %238 = vector.broadcast %cst_74 : f32 to vector<10x1xf32>
    %239 = arith.divf %237, %238 : vector<10x1xf32>
    %240 = vector.broadcast %239 : vector<10x1xf32> to vector<10x64xf32>
    %241 = arith.subf %231, %240 : vector<10x64xf32>
    %242 = arith.mulf %241, %241 : vector<10x64xf32>
    %cst_75 = arith.constant dense<0.000000e+00> : vector<10xf32>
    %243 = vector.multi_reduction <add>, %242, %cst_75 [1] : vector<10x64xf32> to vector<10xf32>
    %244 = vector.shape_cast %243 : vector<10xf32> to vector<10x1xf32>
    %cst_76 = arith.constant 6.400000e+01 : f32
    %245 = vector.broadcast %cst_76 : f32 to vector<10x1xf32>
    %246 = arith.divf %244, %245 : vector<10x1xf32>
    %247 = vector.broadcast %239 : vector<10x1xf32> to vector<10x64xf32>
    %248 = arith.subf %231, %247 : vector<10x64xf32>
    %cst_77 = arith.constant 9.99999974E-6 : f32
    %249 = vector.broadcast %cst_77 : f32 to vector<10x1xf32>
    %250 = arith.addf %246, %249 : vector<10x1xf32>
    %251 = math.rsqrt %250 : vector<10x1xf32>
    %252 = vector.broadcast %251 : vector<10x1xf32> to vector<10x64xf32>
    %253 = arith.mulf %248, %252 : vector<10x64xf32>
    %254 = vector.broadcast %233 : vector<1x64xf32> to vector<10x64xf32>
    %255 = arith.mulf %253, %254 : vector<10x64xf32>
    %256 = vector.broadcast %235 : vector<1x64xf32> to vector<10x64xf32>
    %257 = arith.addf %255, %256 : vector<10x64xf32>
    %258 = arith.truncf %257 : vector<10x64xf32> to vector<10x64xbf16>
    %c0_78 = arith.constant 0 : index
    %c0_79 = arith.constant 0 : index
    %c0_80 = arith.constant 0 : index
    %259 = vector.load %arg12[%c0_78, %c0_79, %c0_80] : memref<1x64x256xbf16, #tpu.memory_space<vmem>>, vector<1x64x256xbf16>
    %260 = vector.shape_cast %259 : vector<1x64x256xbf16> to vector<64x256xbf16>
    %cst_81 = arith.constant dense<0.000000e+00> : vector<10x256xf32>
    %261 = tpu.matmul %258, %260, %cst_81 {dimension_numbers = #tpu.dot_dimension_numbers<[1], [0], [0], [1], [0, 0, 1, 1], [], []>} : vector<10x64xbf16>, vector<64x256xbf16>, vector<10x256xf32> -> vector<10x256xf32>
    %c0_82 = arith.constant 0 : index
    %c0_83 = arith.constant 0 : index
    %c0_84 = arith.constant 0 : index
    %262 = vector.load %arg13[%c0_82, %c0_83, %c0_84] : memref<1x1x256xf32, #tpu.memory_space<vmem>>, vector<1x1x256xf32>
    %263 = vector.shape_cast %262 : vector<1x1x256xf32> to vector<1x256xf32>
    %264 = vector.broadcast %263 : vector<1x256xf32> to vector<10x256xf32>
    %265 = arith.addf %261, %264 : vector<10x256xf32>
    %cst_85 = arith.constant 5.000000e-01 : f32
    %266 = vector.broadcast %cst_85 : f32 to vector<10x256xf32>
    %267 = arith.mulf %266, %265 : vector<10x256xf32>
    %cst_86 = arith.constant 4.471500e-02 : f32
    %268 = vector.broadcast %cst_86 : f32 to vector<10x256xf32>
    %269 = arith.mulf %268, %265 : vector<10x256xf32>
    %270 = arith.mulf %269, %265 : vector<10x256xf32>
    %271 = arith.mulf %270, %265 : vector<10x256xf32>
    %272 = arith.addf %265, %271 : vector<10x256xf32>
    %cst_87 = arith.constant 0.797884583 : f32
    %273 = vector.broadcast %cst_87 : f32 to vector<10x256xf32>
    %274 = arith.mulf %273, %272 : vector<10x256xf32>
    %275 = math.tanh %274 : vector<10x256xf32>
    %cst_88 = arith.constant 1.000000e+00 : f32
    %276 = vector.broadcast %cst_88 : f32 to vector<10x256xf32>
    %277 = arith.addf %276, %275 : vector<10x256xf32>
    %278 = arith.mulf %267, %277 : vector<10x256xf32>
    %279 = arith.truncf %278 : vector<10x256xf32> to vector<10x256xbf16>
    %c0_89 = arith.constant 0 : index
    %c0_90 = arith.constant 0 : index
    %c0_91 = arith.constant 0 : index
    %280 = vector.load %arg14[%c0_89, %c0_90, %c0_91] : memref<1x256x64xbf16, #tpu.memory_space<vmem>>, vector<1x256x64xbf16>
    %281 = vector.shape_cast %280 : vector<1x256x64xbf16> to vector<256x64xbf16>
    %cst_92 = arith.constant dense<0.000000e+00> : vector<10x64xf32>
    %282 = tpu.matmul %279, %281, %cst_92 {dimension_numbers = #tpu.dot_dimension_numbers<[1], [0], [0], [1], [0, 0, 1, 1], [], []>} : vector<10x256xbf16>, vector<256x64xbf16>, vector<10x64xf32> -> vector<10x64xf32>
    %c0_93 = arith.constant 0 : index
    %c0_94 = arith.constant 0 : index
    %c0_95 = arith.constant 0 : index
    %283 = vector.load %arg15[%c0_93, %c0_94, %c0_95] : memref<1x1x64xf32, #tpu.memory_space<vmem>>, vector<1x1x64xf32>
    %284 = vector.shape_cast %283 : vector<1x1x64xf32> to vector<1x64xf32>
    %285 = vector.broadcast %284 : vector<1x64xf32> to vector<10x64xf32>
    %286 = arith.addf %282, %285 : vector<10x64xf32>
    %287 = arith.addf %231, %286 : vector<10x64xf32>
    %c0_96 = arith.constant 0 : index
    %c0_97 = arith.constant 0 : index
    %288 = vector.load %arg21[%c0_96, %c0_97] : memref<10x64xf32, #tpu.memory_space<vmem>>, vector<10x64xf32>
    tpu.vector_store %arg21[%c0_96, %c0_97], %287 {strides = array<i32>} : memref<10x64xf32, #tpu.memory_space<vmem>>, vector<10x64xf32>,
    %c1_i32 = arith.constant 1 : i32
    %289 = arith.cmpi eq, %arg0, %c1_i32 : i32
    %290 = arith.extui %289 : i1 to i32
    %c0_i32_98 = arith.constant 0 : i32
    %291 = arith.cmpi ne, %290, %c0_i32_98 : i32
    scf.if %291 {
      %c0_99 = arith.constant 0 : index
      %c0_100 = arith.constant 0 : index
      %292 = vector.load %arg21[%c0_99, %c0_100] : memref<10x64xf32, #tpu.memory_space<vmem>>, vector<10x64xf32>
      %c0_101 = arith.constant 0 : index
      %c0_102 = arith.constant 0 : index
      %293 = vector.load %arg16[%c0_101, %c0_102] : memref<1x64xf32, #tpu.memory_space<vmem>>, vector<1x64xf32>
      %c0_103 = arith.constant 0 : index
      %c0_104 = arith.constant 0 : index
      %294 = vector.load %arg17[%c0_103, %c0_104] : memref<1x64xf32, #tpu.memory_space<vmem>>, vector<1x64xf32>
      %cst_105 = arith.constant dense<0.000000e+00> : vector<10xf32>
      %295 = vector.multi_reduction <add>, %292, %cst_105 [1] : vector<10x64xf32> to vector<10xf32>
      %296 = vector.shape_cast %295 : vector<10xf32> to vector<10x1xf32>
      %cst_106 = arith.constant 6.400000e+01 : f32
      %297 = vector.broadcast %cst_106 : f32 to vector<10x1xf32>
      %298 = arith.divf %296, %297 : vector<10x1xf32>
      %299 = vector.broadcast %298 : vector<10x1xf32> to vector<10x64xf32>
      %300 = arith.subf %292, %299 : vector<10x64xf32>
      %301 = arith.mulf %300, %300 : vector<10x64xf32>
      %cst_107 = arith.constant dense<0.000000e+00> : vector<10xf32>
      %302 = vector.multi_reduction <add>, %301, %cst_107 [1] : vector<10x64xf32> to vector<10xf32>
      %303 = vector.shape_cast %302 : vector<10xf32> to vector<10x1xf32>
      %cst_108 = arith.constant 6.400000e+01 : f32
      %304 = vector.broadcast %cst_108 : f32 to vector<10x1xf32>
      %305 = arith.divf %303, %304 : vector<10x1xf32>
      %306 = vector.broadcast %298 : vector<10x1xf32> to vector<10x64xf32>
      %307 = arith.subf %292, %306 : vector<10x64xf32>
      %cst_109 = arith.constant 9.99999974E-6 : f32
      %308 = vector.broadcast %cst_109 : f32 to vector<10x1xf32>
      %309 = arith.addf %305, %308 : vector<10x1xf32>
      %310 = math.rsqrt %309 : vector<10x1xf32>
      %311 = vector.broadcast %310 : vector<10x1xf32> to vector<10x64xf32>
      %312 = arith.mulf %307, %311 : vector<10x64xf32>
      %313 = vector.broadcast %293 : vector<1x64xf32> to vector<10x64xf32>
      %314 = arith.mulf %312, %313 : vector<10x64xf32>
      %315 = vector.broadcast %294 : vector<1x64xf32> to vector<10x64xf32>
      %316 = arith.addf %314, %315 : vector<10x64xf32>
      %317 = arith.truncf %316 : vector<10x64xf32> to vector<10x64xbf16>
      %c0_110 = arith.constant 0 : index
      %c0_111 = arith.constant 0 : index
      %318 = vector.load %arg18[%c0_110, %c0_111] : memref<64x128xbf16, #tpu.memory_space<vmem>>, vector<64x128xbf16>
      %cst_112 = arith.constant dense<0.000000e+00> : vector<10x128xf32>
      %319 = tpu.matmul %317, %318, %cst_112 {dimension_numbers = #tpu.dot_dimension_numbers<[1], [0], [0], [1], [0, 0, 1, 1], [], []>} : vector<10x64xbf16>, vector<64x128xbf16>, vector<10x128xf32> -> vector<10x128xf32>
      %c0_113 = arith.constant 0 : index
      %c0_114 = arith.constant 0 : index
      %320 = vector.load %arg19[%c0_113, %c0_114] : memref<1x128xf32, #tpu.memory_space<vmem>>, vector<1x128xf32>
      %321 = vector.broadcast %320 : vector<1x128xf32> to vector<10x128xf32>
      %322 = arith.addf %319, %321 : vector<10x128xf32>
      %c0_115 = arith.constant 0 : index
      %c0_116 = arith.constant 0 : index
      %323 = vector.load %arg20[%c0_115, %c0_116] : memref<10x128xf32, #tpu.memory_space<vmem>>, vector<10x128xf32>
      tpu.vector_store %arg20[%c0_115, %c0_116], %322 {strides = array<i32>} : memref<10x128xf32, #tpu.memory_space<vmem>>, vector<10x128xf32>,
    } else {
    }
    return
  }
  func.func @transform_0(%arg0: i32) -> (i32, i32) {
    %c0_i32 = arith.constant 0 : i32
    %c0_i32_0 = arith.constant 0 : i32
    %c0_i32_1 = arith.constant 0 : i32
    return %c0_i32, %c0_i32_0 : i32, i32
  }
  func.func @transform_1(%arg0: i32) -> (i32, i32) {
    %c0_i32 = arith.constant 0 : i32
    %c0_i32_0 = arith.constant 0 : i32
    %c0_i32_1 = arith.constant 0 : i32
    return %c0_i32, %c0_i32_0 : i32, i32
  }
  func.func @transform_2(%arg0: i32) -> (i32, i32) {
    %c0_i32 = arith.constant 0 : i32
    %c0_i32_0 = arith.constant 0 : i32
    %c0_i32_1 = arith.constant 0 : i32
    return %c0_i32, %c0_i32_0 : i32, i32
  }
  func.func @transform_3(%arg0: i32) -> (i32, i32, i32) {
    %c0_i32 = arith.constant 0 : i32
    %c0_i32_0 = arith.constant 0 : i32
    %c0_i32_1 = arith.constant 0 : i32
    return %arg0, %c0_i32, %c0_i32_0 : i32, i32, i32
  }
  func.func @transform_4(%arg0: i32) -> (i32, i32, i32) {
    %c0_i32 = arith.constant 0 : i32
    %c0_i32_0 = arith.constant 0 : i32
    %c0_i32_1 = arith.constant 0 : i32
    return %arg0, %c0_i32, %c0_i32_0 : i32, i32, i32
  }
  func.func @transform_5(%arg0: i32) -> (i32, i32, i32) {
    %c0_i32 = arith.constant 0 : i32
    %c0_i32_0 = arith.constant 0 : i32
    %c0_i32_1 = arith.constant 0 : i32
    return %arg0, %c0_i32, %c0_i32_0 : i32, i32, i32
  }
  func.func @transform_6(%arg0: i32) -> (i32, i32, i32) {
    %c0_i32 = arith.constant 0 : i32
    %c0_i32_0 = arith.constant 0 : i32
    %c0_i32_1 = arith.constant 0 : i32
    return %arg0, %c0_i32, %c0_i32_0 : i32, i32, i32
  }
  func.func @transform_7(%arg0: i32) -> (i32, i32, i32) {
    %c0_i32 = arith.constant 0 : i32
    %c0_i32_0 = arith.constant 0 : i32
    %c0_i32_1 = arith.constant 0 : i32
    return %arg0, %c0_i32, %c0_i32_0 : i32, i32, i32
  }
  func.func @transform_8(%arg0: i32) -> (i32, i32, i32) {
    %c0_i32 = arith.constant 0 : i32
    %c0_i32_0 = arith.constant 0 : i32
    %c0_i32_1 = arith.constant 0 : i32
    return %arg0, %c0_i32, %c0_i32_0 : i32, i32, i32
  }
  func.func @transform_9(%arg0: i32) -> (i32, i32, i32) {
    %c0_i32 = arith.constant 0 : i32
    %c0_i32_0 = arith.constant 0 : i32
    %c0_i32_1 = arith.constant 0 : i32
    return %arg0, %c0_i32, %c0_i32_0 : i32, i32, i32
  }
  func.func @transform_10(%arg0: i32) -> (i32, i32, i32) {
    %c0_i32 = arith.constant 0 : i32
    %c0_i32_0 = arith.constant 0 : i32
    %c0_i32_1 = arith.constant 0 : i32
    return %arg0, %c0_i32, %c0_i32_0 : i32, i32, i32
  }
  func.func @transform_11(%arg0: i32) -> (i32, i32, i32) {
    %c0_i32 = arith.constant 0 : i32
    %c0_i32_0 = arith.constant 0 : i32
    %c0_i32_1 = arith.constant 0 : i32
    return %arg0, %c0_i32, %c0_i32_0 : i32, i32, i32
  }
  func.func @transform_12(%arg0: i32) -> (i32, i32, i32) {
    %c0_i32 = arith.constant 0 : i32
    %c0_i32_0 = arith.constant 0 : i32
    %c0_i32_1 = arith.constant 0 : i32
    return %arg0, %c0_i32, %c0_i32_0 : i32, i32, i32
  }
  func.func @transform_13(%arg0: i32) -> (i32, i32, i32) {
    %c0_i32 = arith.constant 0 : i32
    %c0_i32_0 = arith.constant 0 : i32
    %c0_i32_1 = arith.constant 0 : i32
    return %arg0, %c0_i32, %c0_i32_0 : i32, i32, i32
  }
  func.func @transform_14(%arg0: i32) -> (i32, i32, i32) {
    %c0_i32 = arith.constant 0 : i32
    %c0_i32_0 = arith.constant 0 : i32
    %c0_i32_1 = arith.constant 0 : i32
    return %arg0, %c0_i32, %c0_i32_0 : i32, i32, i32
  }
  func.func @transform_15(%arg0: i32) -> (i32, i32) {
    %c0_i32 = arith.constant 0 : i32
    %c0_i32_0 = arith.constant 0 : i32
    %c0_i32_1 = arith.constant 0 : i32
    return %c0_i32, %c0_i32_0 : i32, i32
  }
  func.func @transform_16(%arg0: i32) -> (i32, i32) {
    %c0_i32 = arith.constant 0 : i32
    %c0_i32_0 = arith.constant 0 : i32
    %c0_i32_1 = arith.constant 0 : i32
    return %c0_i32, %c0_i32_0 : i32, i32
  }
  func.func @transform_17(%arg0: i32) -> (i32, i32) {
    %c0_i32 = arith.constant 0 : i32
    %c0_i32_0 = arith.constant 0 : i32
    %c0_i32_1 = arith.constant 0 : i32
    return %c0_i32, %c0_i32_0 : i32, i32
  }
  func.func @transform_18(%arg0: i32) -> (i32, i32) {
    %c0_i32 = arith.constant 0 : i32
    %c0_i32_0 = arith.constant 0 : i32
    %c0_i32_1 = arith.constant 0 : i32
    return %c0_i32, %c0_i32_0 : i32, i32
  }
  func.func @transform_19(%arg0: i32) -> (i32, i32) {
    %c0_i32 = arith.constant 0 : i32
    %c0_i32_0 = arith.constant 0 : i32
    %c0_i32_1 = arith.constant 0 : i32
    return %c0_i32, %c0_i32_0 : i32, i32
  }
}

</mosaic_0001>

<bundles_post_ra>
// kernel: tile.9
= control target key start
LH: loop header
LB: loop body
LE: loop exit
PB: predicated region body
PF: predicated region fallthrough
CT: control target
= control target key end

     0   :  { %vm3_vm0 = vcmask 523264   ;;  %s34_s0 = inlined_call_operand.vmem [shape: f32[2,5,64], index: 0, kind: input, shape index: {}]   ;;  %s35_s1 = inlined_call_operand.vmem [shape: f32[10,64], index: 1, kind: output, shape index: {}]  }
   0x1   :  { %v2_v0 = vld [vmem:[%s34_s0] sm:$0x1f]   ;;  %v10_v1 = vld [vmem:[%s34_s0 + $0x8] sm:$0x1f]  }
   0x2   :  { %4 = vst.msk [vmem:[%s35_s1] sm:$0x1f] %vm3_vm0, %v2_v0   ;;  %11 = vst.msk [vmem:[%s35_s1 + $0x5] sm:$0x1f] %vm3_vm0, %v10_v1  }

// kernel: vit_forward_pallas.1
= control target key start
LH: loop header
LB: loop body
LE: loop exit
PB: predicated region body
PF: predicated region fallthrough
CT: control target
= control target key end

     0   :  { %s4792_s0 = inlined_call_operand.vmem [shape: bf16[10,768], index: 0, kind: input, shape index: {}]   ;;  %s4793_s1 = inlined_call_operand.vmem [shape: bf16[768,64], index: 1, kind: input, shape index: {}]   ;;  %s4794_s2 = inlined_call_operand.vmem [shape: f32[10,64], index: 2, kind: input, shape index: {}]   ;;  %s4795_s3 = inlined_call_operand.vmem [shape: f32[2,1,64], index: 3, kind: input, shape index: {}]   ;;  %s4796_s4 = inlined_call_operand.vmem [shape: f32[2,1,64], index: 4, kind: input, shape index: {}]   ;;  %s4797_s5 = inlined_call_operand.vmem [shape: bf16[2,64,192], index: 5, kind: input, shape index: {}]   ;;  %s4798_s6 = inlined_call_operand.vmem [shape: f32[2,1,192], index: 6, kind: input, shape index: {}]   ;;  %s4799_s7 = inlined_call_operand.vmem [shape: bf16[2,64,64], index: 7, kind: input, shape index: {}]   ;;  %s4800_s8 = inlined_call_operand.vmem [shape: f32[2,1,64], index: 8, kind: input, shape index: {}]   ;;  %s4801_s9 = inlined_call_operand.vmem [shape: f32[2,1,64], index: 9, kind: input, shape index: {}]   ;;  %s4802_s10 = inlined_call_operand.vmem [shape: f32[2,1,64], index: 10, kind: input, shape index: {}]   ;;  %s4803_s11 = inlined_call_operand.vmem [shape: bf16[2,64,256], index: 11, kind: input, shape index: {}]   ;;  %s4804_s12 = inlined_call_operand.vmem [shape: f32[2,1,256], index: 12, kind: input, shape index: {}]   ;;  %s4805_s13 = inlined_call_operand.vmem [shape: bf16[2,256,64], index: 13, kind: input, shape index: {}]   ;;  %s4806_s14 = inlined_call_operand.vmem [shape: f32[2,1,64], index: 14, kind: input, shape index: {}]   ;;  %s4807_s15 = inlined_call_operand.vmem [shape: f32[1,64], index: 15, kind: input, shape index: {}]   ;;  %s4808_s16 = inlined_call_operand.vmem [shape: f32[1,64], index: 16, kind: input, shape index: {}]   ;;  %s4809_s17 = inlined_call_operand.vmem [shape: bf16[64,128], index: 17, kind: input, shape index: {}]   ;;  %s4810_s18 = inlined_call_operand.vmem [shape: f32[1,128], index: 18, kind: input, shape index: {}]   ;;  %s4811_s19 = inlined_call_operand.vmem [shape: f32[10,128], index: 19, kind: output, shape index: {}]  }
   0x1   :  { %4818 = sst [smem:[#allocation4_spill]] %s4792_s0  ;;  %s4202_s0 = smov 0  }
   0x2   :  { %4819 = sst [smem:[#allocation5_spill]] %s4793_s1 }
   0x3   :  { %4820 = sst [smem:[#allocation6_spill]] %s4794_s2 }
   0x4   :  { %4821 = sst [smem:[#allocation7_spill]] %s4795_s3 }
   0x5   :  { %4822 = sst [smem:[#allocation8_spill]] %s4797_s5 }
   0x6   :  { %4823 = sst [smem:[#allocation9_spill]] %s4798_s6 }
   0x7   :  { %4824 = sst [smem:[#allocation10_spill]] %s4807_s15 }
   0x8   :  { %4825 = sst [smem:[#allocation11_spill]] %s4808_s16 }
   0x9   :  { %4826 = sst [smem:[#allocation12_spill]] %s4809_s17 }
   0xa   :  { %4827 = sst [smem:[#allocation13_spill]] %s4810_s18 }
   0xb   :  { %4828 = sst [smem:[#allocation14_spill]] %s4811_s19 }
   0xc LB: > { %4829 = sst [smem:[#allocation3_spill]] %s4087_s0  ;;  %s4208_s30 = sadd.s32 4294967295, %s4087_s0   ;;  %s4087_s0 = sphi %s4202_s0, %s29_s0  }
   0xd   : > { %p3431_p0 = scmp.ge.s32.totalorder %s4087_s0, 1  ;;  %p628_p1 = scmp.lt.s32.totalorder %s4087_s0, 3 }
   0xf   : > { %p629_p2 = pnand %p3431_p0, %p628_p1 }
  0x10   : > { %p720_p3 = scmp.lt.s32.totalorder (!%p629_p2), %s4208_s30, 1  ;;  %s4831_s5 = sld [smem:[#allocation8_spill]] (!%p629_p2) }
  0x11   : > { %632 = sbr.rel (%p629_p2) target bundleno = 6170 (0x181a), region = 96  ;;  %s4832_s6 = sld [smem:[#allocation9_spill]] (!%p629_p2) }
  0x12   : > { %p3442_p4 = scmp.ne.s32.totalorder (!%p629_p2), %s4208_s30, 0 }
  0x18   : > { %s4214_s20 = scalar_select %p720_p3, %s4208_s30, 1 }
  0x19   : > { %770 = sbr.rel (%p3442_p4) target bundleno = 316 (0x13c), region = 100  ;;  %s4833_s28 = sld [smem:[#allocation5_spill]] (!%p3442_p4)  ;;  %vm1316_vm0 = vcmask (!%p3442_p4), 523264   ;;  %vm1318_vm1 = vcmask (!%p3442_p4), 517120  }
  0x1a   : > { %s3576_s3 = sshll.u32 %s4214_s20, 6  ;;  %s3434_s26 = sshll.u32 %s4214_s20, 1 }
  0x1b   : > { %s4229_s29 = scalar_lea.vmem %s4831_s5, %s3576_s3  ;;  %s4234_s0 = scalar_lea.vmem %s4832_s6, %s3434_s26 }
  0x1c   : > { %s3577_s19 = sshll.u32 %s4214_s20, 5  ;;  %s748_s21 = scalar_lea.vmem %s4802_s10, %s4214_s20 }
  0x1d   : > { %s4244_s24 = scalar_lea.vmem %s4799_s7, %s3577_s19  ;;  %s4257_s17 = scalar_lea.vmem %s4803_s11, %s3576_s3 }
  0x1e   : > { %s4262_s22 = scalar_lea.vmem %s4804_s12, %s3434_s26  ;;  %s3579_s19 = sshll.u32 %s4214_s20, 7 }
  0x1f   : > { %s4268_s15 = scalar_lea.vmem %s4805_s13, %s3579_s19  ;;  %s765_s5 = scalar_lea.vmem %s4806_s14, %s4214_s20  ;;  %v3922_v0 = vld [vmem:[%s4833_s28 + $0x40] sm:$0xff] (!%p3442_p4)   ;;  %v3926_v4 = vld [vmem:[%s4833_s28 + $0x48] sm:$0xff] (!%p3442_p4)   ;;  %v3930_v8 = vld [vmem:[%s4833_s28 + $0x50] sm:$0xff] (!%p3442_p4)  }
  0x20   : > { %v3923_v1 = vld [vmem:[%s4833_s28] sm:$0xff]   ;;  %3580 = vmatprep.subr.bf16.mxu0 %v3922_v0  ;;  %v3927_v5 = vld [vmem:[%s4833_s28 + $0x8] sm:$0xff]   ;;  %v3931_v9 = vld [vmem:[%s4833_s28 + $0x10] sm:$0xff]   ;;  %s4834_s23 = sld [smem:[#allocation4_spill]]  ;;  %s4835_s18 = sld [smem:[#allocation6_spill]] }
  0x21   : > { %v3924_v2 = vld [vmem:[%s4833_s28 + $0xc0] sm:$0xff]   ;;  %3581 = vmatpush3.bf16.msra.mxu0 %v3923_v1  ;;  %v3928_v6 = vld [vmem:[%s4833_s28 + $0xc8] sm:$0xff]   ;;  %v3932_v10 = vld [vmem:[%s4833_s28 + $0xd0] sm:$0xff]  }
  0x22   : > { %v3925_v3 = vld [vmem:[%s4833_s28 + $0x80] sm:$0xff]   ;;  %3602 = vmatprep.subr.bf16.mxu1 %v3924_v2  ;;  %3582 = vmatprep.subr.bf16.mxu0 %v3926_v4  ;;  %v3929_v7 = vld [vmem:[%s4833_s28 + $0x88] sm:$0xff]   ;;  %v3933_v11 = vld [vmem:[%s4833_s28 + $0x90] sm:$0xff]  }
  0x23   : > { %3603 = vmatpush3.bf16.msra.mxu1 %v3925_v3  ;;  %v3934_v12 = vld [vmem:[%s4833_s28 + $0x58] sm:$0xff]   ;;  %v3938_v16 = vld [vmem:[%s4833_s28 + $0x60] sm:$0xff]   ;;  %v3942_v20 = vld [vmem:[%s4833_s28 + $0x68] sm:$0xff]  }
  0x24   : > { %3604 = vmatprep.subr.bf16.mxu1 %v3928_v6  ;;  %v3935_v13 = vld [vmem:[%s4833_s28 + $0x18] sm:$0xff]   ;;  %v3939_v17 = vld [vmem:[%s4833_s28 + $0x20] sm:$0xff]   ;;  %v3943_v21 = vld [vmem:[%s4833_s28 + $0x28] sm:$0xff]  }
  0x25   : > { %3583 = vmatpush3.bf16.msra.mxu0 %v3927_v5  ;;  %v3936_v14 = vld [vmem:[%s4833_s28 + $0xd8] sm:$0xff]   ;;  %v3940_v18 = vld [vmem:[%s4833_s28 + $0xe0] sm:$0xff]   ;;  %v3944_v22 = vld [vmem:[%s4833_s28 + $0xe8] sm:$0xff]  }
  0x26   : > { %3584 = vmatprep.subr.bf16.mxu0 %v3930_v8  ;;  %v3937_v15 = vld [vmem:[%s4833_s28 + $0x98] sm:$0xff]   ;;  %v3941_v19 = vld [vmem:[%s4833_s28 + $0xa0] sm:$0xff]   ;;  %v3945_v23 = vld [vmem:[%s4833_s28 + $0xa8] sm:$0xff]  }
  0x27   : > { %3605 = vmatpush3.bf16.msra.mxu1 %v3929_v7  ;;  %v3946_v24 = vld [vmem:[%s4833_s28 + $0x70] sm:$0xff]   ;;  %v3950_v28 = vld [vmem:[%s4833_s28 + $0x78] sm:$0xff]   ;;  %v3957_v34 = vld [vmem:[%s4833_s28 + $0x140] sm:$0xff]  }
  0x28   : > { %3606 = vmatprep.subr.bf16.mxu1 %v3932_v10  ;;  %v3947_v25 = vld [vmem:[%s4833_s28 + $0x30] sm:$0xff]   ;;  %v3951_v29 = vld [vmem:[%s4833_s28 + $0x38] sm:$0xff]   ;;  %v3958_v35 = vld [vmem:[%s4834_s23 + $0x8] ss:$24 sps:$4 sm:$0x1f]  }
  0x29   : > { %3585 = vmatpush3.bf16.msra.mxu0 %v3931_v9  ;;  %v3948_v26 = vld [vmem:[%s4833_s28 + $0xf0] sm:$0xff]   ;;  %v3952_v30 = vld [vmem:[%s4833_s28 + $0xf8] sm:$0xff]   ;;  %v3960_v36 = vld [vmem:[%s4834_s23 + $0xc] ss:$24 sps:$4 sm:$0x1f]  }
  0x2a   : > { %3586 = vmatprep.subr.bf16.mxu0 %v3934_v12  ;;  %v3949_v27 = vld [vmem:[%s4833_s28 + $0xb0] sm:$0xff]   ;;  %v3953_v31 = vld [vmem:[%s4834_s23] ss:$24 sps:$4 sm:$0x1f]   ;;  %1266 = vmatprep.mubr.bf16.mxu1 %v3960_v36  ;;  %v3962_v38 = vld [vmem:[%s4833_s28 + $0x148] sm:$0xff]  }
  0x2b   : > { %3607 = vmatpush3.bf16.msra.mxu1 %v3933_v11  ;;  %v3955_v32 = vld [vmem:[%s4834_s23 + $0x4] ss:$24 sps:$4 sm:$0x1f]   ;;  %v3963_v39 = vld [vmem:[%s4833_s28 + $0x108] sm:$0xff]   ;;  %v3964_v40 = vld [vmem:[%s4833_s28 + $0x150] sm:$0xff]  }
  0x2c   : > { %3608 = vmatprep.subr.bf16.mxu1 %v3936_v14  ;;  %v3956_v33 = vld [vmem:[%s4833_s28 + $0xb8] sm:$0xff]   ;;  %1225 = vmatprep.mubr.bf16.mxu0 %v3955_v32  ;;  %v3961_v37 = vld [vmem:[%s4833_s28 + $0x100] sm:$0xff]   ;;  %v3965_v41 = vld [vmem:[%s4833_s28 + $0x110] sm:$0xff]  }
  0x2d   : > { %3587 = vmatpush3.bf16.msra.mxu0 %v3935_v13  ;;  %v3966_v42 = vld [vmem:[%s4833_s28 + $0x158] sm:$0xff]   ;;  %v3968_v44 = vld [vmem:[%s4833_s28 + $0x160] sm:$0xff]   ;;  %v3970_v46 = vld [vmem:[%s4833_s28 + $0x168] sm:$0xff]  }
  0x2e   : > { %3588 = vmatprep.subr.bf16.mxu0 %v3938_v16  ;;  %v3967_v43 = vld [vmem:[%s4833_s28 + $0x118] sm:$0xff]   ;;  %v3969_v45 = vld [vmem:[%s4833_s28 + $0x120] sm:$0xff]   ;;  %v3978_v47 = vld [vmem:[%s4834_s23 + $0x14] ss:$24 sps:$4 sm:$0x1f]  }
  0x2f   : > { %3609 = vmatpush3.bf16.msra.mxu1 %v3937_v15  ;;  %v3971_v48 = vld [vmem:[%s4833_s28 + $0x128] sm:$0xff]   ;;  %v3972_v49 = vld [vmem:[%s4833_s28 + $0x170] sm:$0xff]   ;;  %v3974_v51 = vld [vmem:[%s4833_s28 + $0x178] sm:$0xff]  }
  0x30   : > { %3610 = vmatprep.subr.bf16.mxu1 %v3940_v18  ;;  %v3973_v50 = vld [vmem:[%s4833_s28 + $0x130] sm:$0xff]   ;;  %v3975_v52 = vld [vmem:[%s4833_s28 + $0x138] sm:$0xff]   ;;  %v873_v55 = vld [vmem:[%s4835_s18] sm:$0xff] }
  0x31   : > { %3589 = vmatpush3.bf16.msra.mxu0 %v3939_v17  ;;  %v3976_v53 = vld [vmem:[%s4834_s23 + $0x10] ss:$24 sps:$4 sm:$0x1f]  }
  0x32   : > { %3590 = vmatprep.subr.bf16.mxu0 %v3942_v20  ;;  %v874_v60 = vld [vmem:[%s4835_s18 + $0x8] sm:$0x3] }
  0x33   : > { %3611 = vmatpush3.bf16.msra.mxu1 %v3941_v19 }
  0x34   : > { %3612 = vmatprep.subr.bf16.mxu1 %v3944_v22 }
  0x35   : > { %3591 = vmatpush3.bf16.msra.mxu0 %v3943_v21 }
  0x36   : > { %3592 = vmatprep.subr.bf16.mxu0 %v3946_v24 }
  0x37   : > { %3613 = vmatpush3.bf16.msra.mxu1 %v3945_v23 }
  0x38   : > { %3614 = vmatprep.subr.bf16.mxu1 %v3948_v26 }
  0x39   : > { %3593 = vmatpush3.bf16.msra.mxu0 %v3947_v25 }
  0x3a   : > { %3594 = vmatprep.subr.bf16.mxu0 %v3950_v28 }
  0x3b   : > { %3615 = vmatpush3.bf16.msra.mxu1 %v3949_v27 }
  0x3c   : > { %3616 = vmatprep.subr.bf16.mxu1 %v3952_v30 }
  0x3d   : > { %3595 = vmatpush3.bf16.msra.mxu0 %v3951_v29 }
  0x3e   : > { %3624 = vmatprep.subr.bf16.mxu0 %v3957_v34 }
  0x3f   : > { %3617 = vmatpush3.bf16.msra.mxu1 %v3956_v33 }
  0x40   : > { %1226 = vmatmul.mubr.bf16.vlgmr.msra.gmra.mrb[0].mxu0 %v3953_v31 }
  0x41   : > { %3625 = vmatpush3.bf16.msra.mxu0 %v3961_v37  ;;  %1307 = vmatprep.mubr.bf16.mxu0 %v3978_v47 }
  0x42   : > { %1267 = vmatmul.mubr.bf16.vlgmr.msra.gmra.mrb[0].mxu1 %v3958_v35  ;;  %3626 = vmatprep.subr.bf16.mxu0 %v3962_v38 }
  0x45   : > { %3627 = vmatpush3.bf16.msra.mxu0 %v3963_v39 }
  0x46   : > { %3628 = vmatprep.subr.bf16.mxu0 %v3964_v40 }
  0x49   : > { %3629 = vmatpush3.bf16.msra.mxu0 %v3965_v41 }
  0x4a   : > { %3630 = vmatprep.subr.bf16.mxu0 %v3966_v42 }
  0x4d   : > { %3631 = vmatpush3.bf16.msra.mxu0 %v3967_v43 }
  0x4e   : > { %3632 = vmatprep.subr.bf16.mxu0 %v3968_v44 }
  0x51   : > { %3633 = vmatpush3.bf16.msra.mxu0 %v3969_v45 }
  0x52   : > { %3634 = vmatprep.subr.bf16.mxu0 %v3970_v46 }
  0x55   : > { %3635 = vmatpush3.bf16.msra.mxu0 %v3971_v48 }
  0x56   : > { %3636 = vmatprep.subr.bf16.mxu0 %v3972_v49 }
  0x59   : > { %3637 = vmatpush3.bf16.msra.mxu0 %v3973_v50 }
  0x5a   : > { %3638 = vmatprep.subr.bf16.mxu0 %v3974_v51 }
  0x5d   : > { %3639 = vmatpush3.bf16.msra.mxu0 %v3975_v52 }
  0x60   : > { %1308 = vmatmul.mubr.bf16.vlgmr.msra.gmra.mrb[4].mxu0 %v3976_v53 }
 0x113   : > { %v3596_v54 = vpop.f32.mrb[0].mxu0 }
 0x114   : > { %v3597_v56 = vpop.f32.mrb[1].mxu0 }
 0x115   : > { %v3598_v57 = vadd.f32 %v3597_v56, %v3596_v54  ;;  %v3599_v58 = vpop.f32.mrb[2].mxu0  ;;  %v3618_v59 = vpop.f32.mrb[0].mxu1 }
 0x116   : > { %v3600_v61 = vpop.f32.mrb[3].mxu0  ;;  %v3619_v0 = vpop.f32.mrb[1].mxu1 }
 0x117   : > { %v1228_v62 = vadd.f32 %v3598_v57, %v873_v55  ;;  %v3601_v63 = vadd.f32 %v3600_v61, %v3599_v58  ;;  %v3620_v1 = vadd.f32 %v3619_v0, %v3618_v59  ;;  %v3621_v2 = vpop.f32.mrb[2].mxu1 }
 0x118   : > { %v3622_v4 = vpop.f32.mrb[3].mxu1 }
 0x119   : > { %v1231_v3 = vadd.f32 %v3601_v63, %v874_v60  ;;  %v1269_v5 = vadd.f32 %v3620_v1, %v1228_v62  ;;  %v3623_v6 = vadd.f32 %v3622_v4, %v3621_v2 }
 0x11b   : > { %v1272_v7 = vadd.f32 %v3623_v6, %v1231_v3 }
 0x133   : > { %v3640_v8 = vpop.f32.mrb[4].mxu0 }
 0x134   : > { %v3641_v9 = vpop.f32.mrb[5].mxu0 }
 0x135   : > { %v3642_v10 = vadd.f32 %v3641_v9, %v3640_v8  ;;  %v3643_v11 = vpop.f32.mrb[6].mxu0 }
 0x136   : > { %v3644_v12 = vpop.f32.mrb[7].mxu0 }
 0x137   : > { %v1310_v13 = vadd.f32 %v3642_v10, %v1269_v5  ;;  %v3645_v14 = vadd.f32 %v3644_v12, %v3643_v11 }
 0x139   : > { %1317 = vst.msk [vmem:[#allocation2] sm:$0xff] %vm1316_vm0, %v1310_v13  ;;  %v1313_v15 = vadd.f32 %v3645_v14, %v1272_v7 }
 0x13b   : > { %1319 = vst.msk [vmem:[#allocation2 + $0x8] sm:$0x3] %vm1318_vm1, %v1313_v15 }
 0x13c PF: > { %vm1324_vm2 = vcmask 523264   ;;  %vm1328_vm3 = vcmask 517120   ;;  %v3979_v30 = vld [vmem:[%s4229_s29 + $0x4] ss:$8 sps:$4 sm:$0xff]   ;;  %v3981_v31 = vld [vmem:[%s4229_s29] ss:$8 sps:$4 sm:$0xff]   ;;  %s4838_s26 = scalar_lea.vmem %s4796_s4, %s4214_s20  ;;  %v1380_v56 = vlaneseq  ;;  %s4839_s3 = scalar_lea.vmem %s4800_s8, %s4214_s20 }
 0x13d   : > { %1433 = vmatprep.subr.bf16.mxu1 %v3979_v30  ;;  %v3982_v32 = vld [vmem:[%s4229_s29 + $0x14] ss:$8 sps:$4 sm:$0xff]   ;;  %v3984_v33 = vld [vmem:[%s4229_s29 + $0x10] ss:$8 sps:$4 sm:$0xff]   ;;  %v3985_v34 = vld [vmem:[%s4229_s29 + $0x24] ss:$8 sps:$4 sm:$0xff]  }
 0x13e   : > { %1434 = vmatpush1.bf16.msra.mxu1 %v3981_v31  ;;  %v3987_v35 = vld [vmem:[%s4229_s29 + $0x20] ss:$8 sps:$4 sm:$0xff]   ;;  %v3988_v36 = vld [vmem:[%s4229_s29 + $0x34] ss:$8 sps:$4 sm:$0xff]   ;;  %v3990_v37 = vld [vmem:[%s4229_s29 + $0x30] ss:$8 sps:$4 sm:$0xff]  }
 0x13f   : > { %1435 = vmatprep.subr.bf16.mxu1 %v3982_v32  ;;  %v4089_v38 = vmov 0   ;;  %s4836_s6 = sld [smem:[#allocation7_spill]]  ;;  %v3498_v51 = vld [vmem:[%s4838_s26] ss:$0 sm:$0xff]  ;;  %v4467_v57 = vshrl.u32 %v1380_v56, 7  ;;  %v4090_v58 = vmov 0.0  }
 0x140   : > { %v1320_v16 = vld [vmem:[#allocation2] sm:$0xff]  ;;  %1465 = vmatprep.mubr.bf16.mxu1 %v4089_v38  ;;  %3733 = vmatprep.subr.bf16.mxu0 %v4090_v58  ;;  %vm4091_vm4 = vmmov 0   ;;  %s4093_s16 = smov 64   ;;  %s4094_s19 = smov 112   ;;  %vm1489_vm5 = vcmask 130048   ;;  %vm1553_vm6 = vcmask 1041408  }
 0x141   : > { %v1325_v18 = vsel %vm1324_vm2, %v1320_v16, 0.0  ;;  %v1382_v59 = vsub.s32 0, %v4467_v57  ;;  %v1378_v60 = vld [vmem:[%s4234_s0] sm:$0x3]  ;;  %v1386_v61 = vsub.s32 1, %v4467_v57  ;;  %3735 = vmatprep.mubr.msk.bf16.mxu0 %vm4091_vm4, %v4090_v58  ;;  %s4092_s0 = smov 48  }
 0x142   : > { %v1321_v17 = vld [vmem:[#allocation2 + $0x8] sm:$0x3]  ;;  %1326 = vadd.xlane.f32.xlu0 %v1325_v18  ;;  %1436 = vmatpush1.bf16.msra.mxu1 %v3984_v33  ;;  %vm1554_vm7 = vcmask 1042432   ;;  %v4095_v15 = vmov 65535   ;;  %vm1536_vm8 = vcmask 36864   ;;  %s4096_s27 = smov 96  }
 0x143   : > { %v1329_v19 = vsel %vm1328_vm3, %v1321_v17, 0.0  ;;  %1437 = vmatprep.subr.bf16.mxu1 %v3985_v34  ;;  %v1383_v62 = vrot.slane %v1378_v60, %v1382_v59  ;;  %v1387_v0 = vrot.slane %v1378_v60, %v1386_v61  ;;  %s4097_s2 = smov 32   ;;  %vm1549_vm9 = vcmask 39936   ;;  %s4098_s25 = smov 16  }
 0x144   : > { %vm2768_vm10 = vcmask 1044480   ;;  %p3565_p5 = scmp.ne.s32.totalorder %s4208_s30, 1 }
 0x145   : > { %s4837_s29 = scalar_lea.vmem %s4836_s6, %s4214_s20  ;;  %s4099_s6 = smov 80   ;;  %vm4101_vm11 = vmmov (!%p3565_p5), 0  }
 0x146   : > { %1330 = vadd.xlane.f32.xlu0 %v1329_v19  ;;  %1438 = vmatpush1.bf16.msra.mxu1 %v3987_v35  ;;  %v3497_v47 = vld [vmem:[%s4837_s29] ss:$0 sm:$0xff] }
 0x147   : > { %1439 = vmatprep.subr.bf16.mxu1 %v3988_v36 }
 0x14a   : > { %1440 = vmatpush1.bf16.msra.mxu1 %v3990_v37 }
 0x14b   : > { %3721 = vmatprep.subr.bf16.mxu1 %v4090_v58 }
 0x1cf   : > { %v1327_v20 = vpop.xlane.xlu0 %1326 }
 0x1d0   : > { %v1333_v21 = vmul.f32 0.015625, %v1327_v20 }
 0x1d2   : > { %v1335_v22 = vsub.f32 %v1320_v16, %v1333_v21  ;;  %v1555_v16 = vsel %vm1553_vm6, 4294967295, %v4095_v15 }
 0x1d3   : > { %v1331_v23 = vpop.xlane.xlu0 %1330  ;;  %v4500_v18 = vsel %vm1554_vm7, %v1555_v16, 0 }
 0x1d4   : > { %v1334_v24 = vmul.f32 0.015625, %v1331_v23  ;;  %v1337_v25 = vmul.f32 %v1335_v22, %v1335_v22 }
 0x1d6   : > { %v1336_v26 = vsub.f32 %v1321_v17, %v1334_v24  ;;  %v1339_v27 = vsel %vm1324_vm2, %v1337_v25, 0.0 }
 0x1d7   : > { %1340 = vadd.xlane.f32.xlu1 %v1339_v27 }
 0x1d8   : > { %v1338_v28 = vmul.f32 %v1336_v26, %v1336_v26 }
 0x1da   : > { %v1342_v29 = vsel %vm1328_vm3, %v1338_v28, 0.0 }
 0x1db   : > { %1343 = vadd.xlane.f32.xlu1 %v1342_v29 }
 0x264   : > { %v1341_v39 = vpop.xlane.xlu1 %1340 }
 0x265   : > { %v1345_v40 = vmul.f32 0.015625, %v1341_v39 }
 0x267   : > { %v1347_v41 = vadd.f32 1e-05, %v1345_v40 }
 0x268   : > { %v1344_v42 = vpop.xlane.xlu1 %1343 }
 0x269   : > { %4023 = vrsqrt.f32 %v1347_v41  ;;  %v1346_v43 = vmul.f32 0.015625, %v1344_v42 }
 0x26b   : > { %v1348_v44 = vadd.f32 1e-05, %v1346_v43 }
 0x26d   : > { %4025 = vrsqrt.f32 %v1348_v44 }
 0x273   : > { %v4024_v45 = vpop.eup %4023 }
 0x274   : > { %v1351_v46 = vmul.f32 %v4024_v45, %v1335_v22 }
 0x276   : > { %v1359_v50 = vmul.f32 %v3497_v47, %v1351_v46 }
 0x277   : > { %v4026_v48 = vpop.eup %4025 }
 0x278   : > { %v1352_v49 = vmul.f32 %v4026_v48, %v1336_v26  ;;  %v1367_v53 = vadd.f32 %v3498_v51, %v1359_v50 }
 0x27a   : > { %v1360_v52 = vmul.f32 %v3497_v47, %v1352_v49 }
 0x27c   : > { %v1368_v54 = vadd.f32 %v3498_v51, %v1360_v52 }
 0x27e   : > { %v1369_v55 = vpack.c.bf16 %v1368_v54, %v1367_v53 }
 0x280   : > { %3507 = vmatmul.mubr.msk.bf16.vlgmr.msra.gmra.mrb[0].mxu1 %vm1324_vm2, %v1369_v55  ;;  %v4536_v55 = vld [vmem:[%s4244_s24 + $0x8] sm:$0xff]  }
 0x281   : > { %3723 = vmatprep.mubr.msk.bf16.mxu1 %vm4091_vm4, %v4090_v58 }
 0x353   : > { %v1467_v63 = vpop.f32.mrb[0].mxu1 }
 0x354   : > { %v1468_v1 = vadd.f32 %v1467_v63, %v1383_v62  ;;  %v1469_v2 = vpop.f32.mrb[1].mxu1 }
 0x355   : > { %v1471_v3 = vpop.f32.mrb[2].mxu1  ;;  %v1470_v7 = vadd.f32 %v1469_v2, %v1387_v0 }
 0x356   : > { %v4482_v4 = vpack.c.bf16 %v1468_v1, %v1468_v1  ;;  %v1472_v5 = vadd.f32 %v1471_v3, %v1383_v62  ;;  %v1473_v6 = vpop.f32.mrb[3].mxu1 }
 0x357   : > { %v1474_v8 = vadd.f32 %v1473_v6, %v1387_v0  ;;  %v4498_v17 = vpack.c.bf16 %v1470_v7, %v1470_v7 }
 0x358   : > { %v4484_v9 = vpack.c.bf16 %v1472_v5, %v1468_v1  ;;  %1603 = vrot.lane.b32.xlu1 %v4482_v4, %s4092_s0  ;;  %1487 = vrot.lane.b32.xlu0 %v4482_v4, %s4093_s16  ;;  %v4541_v1 = vld [vmem:[%s4244_s24] sm:$0xff]  }
 0x359   : > { %v4490_v10 = vpack.c.bf16 %v1474_v8, %v1470_v7  ;;  %v1558_v20 = vand.u32 %v4500_v18, %v4498_v17 }
 0x35c   : > { %1601 = vrot.lane.b32.xlu1 %v4482_v4, %s4094_s19 }
 0x3ca   : > { %v1604_v11 = vpop.permute.xlu1 %1603  ;;  %v1488_v12 = vpop.permute.xlu0 %1487 }
 0x3cb   : > { %v1494_v13 = vsel %vm1489_vm5, %v1488_v12, 0  ;;  %v1609_v14 = vsel %vm1489_vm5, %v1604_v11, 0 }
 0x3cc   : > { %3722 = vmatpush3.bf16.xpose.msra.mxu1 %v1494_v13  ;;  %3734 = vmatpush3.bf16.xpose.msra.mxu0 %v1609_v14 }
 0x3cd   : > { %3727 = vmatprep.subr.bf16.mxu1 %v4090_v58  ;;  %3745 = vmatprep.subr.bf16.mxu0 %v4090_v58 }
 0x3ce   : > { %v1602_v19 = vpop.permute.xlu1 %1601 }
 0x3d3   : > { %3724 = vmatmul.mubr.msk.bf16.vlgmr.msra.gmra.mrb[4].mxu1 %vm1489_vm5, %v4482_v4  ;;  %3736 = vmatmul.mubr.msk.bf16.vlgmr.msra.gmra.mrb[0].mxu0 %vm1489_vm5, %v1602_v19 }
 0x3d4   : > { %3728 = vmatpush3.bf16.msra.mxu1 %v1558_v20  ;;  %3729 = vmatprep.mubr.msk.bf16.mxu1 %vm4091_vm4, %v4090_v58 }
 0x3d5   : > { %3739 = vmatprep.subr.bf16.mxu1 %v4090_v58  ;;  %3747 = vmatprep.mubr.msk.bf16.mxu0 %vm4091_vm4, %v4090_v58 }
 0x3d6   : > { %3746 = vmatpush3.bf16.msra.mxu0 %v4536_v55 }
 0x3d7   : > { %3751 = vmatprep.subr.bf16.mxu0 %v4090_v58 }
 0x4a6   : > { %v1530_v21 = vpop.f32.mrb[4].mxu1  ;;  %v1645_v22 = vpop.f32.mrb[0].mxu0 }
 0x4a7   : > { %v3725_v23 = vpop.f32.mrb[5].mxu1  ;;  %v3737_v24 = vpop.f32.mrb[1].mxu0  ;;  %v1651_v25 = vsel %vm1536_vm8, %v1645_v22, -inf  ;;  %v1537_v26 = vsel %vm1536_vm8, %v1530_v21, -inf }
 0x4a8   : > { %v1648_v27 = vpop.f32.mrb[2].mxu0  ;;  %1652 = vmax.xlane.f32.xlu0 %v1651_v25  ;;  %1538 = vmax.xlane.f32.xlu1 %v1537_v26  ;;  %v1533_v28 = vpop.f32.mrb[6].mxu1 }
 0x4a9   : > { %v3726_v29 = vpop.f32.mrb[7].mxu1  ;;  %v3738_v30 = vpop.f32.mrb[3].mxu0 }
 0x4aa   : > { %v4570_v30 = vld [vmem:[%s4244_s24 + $0x10] sm:$0xff]  }
 0x4b9   : > { %1664 = vrot.lane.b32.xlu1 %v4498_v17, %s4094_s19 }
 0x4bd   : > { %1811 = vrot.lane.b32.xlu1 %v4482_v4, %s4096_s27 }
 0x535   : > { %v1539_v31 = vpop.xlane.xlu1 %1538  ;;  %v1653_v32 = vpop.xlane.xlu0 %1652 }
 0x536   : > { %v1540_v33 = vsub.f32 %v1530_v21, %v1539_v31  ;;  %v1654_v34 = vsub.f32 %v1645_v22, %v1653_v32 }
 0x538   : > { %v1541_v35 = vmul.f32 1.442695, %v1540_v33  ;;  %v1655_v36 = vmul.f32 1.442695, %v1654_v34 }
 0x539   : > { %v1665_v45 = vpop.permute.xlu1 %1664 }
 0x53a   : > { %4027 = vpow2.f32 %v1541_v35  ;;  %v1670_v49 = vand.u32 %v1665_v45, %v4500_v18 }
 0x53b   : > { %4029 = vpow2.f32 %v1655_v36 }
 0x53d   : > { %v1812_v54 = vpop.permute.xlu1 %1811 }
 0x544   : > { %v4028_v37 = vpop.eup %4027 }
 0x545   : > { %v1543_v39 = vsel %vm1536_vm8, %v4028_v37, 0.0  ;;  %v4030_v40 = vpop.eup %4029 }
 0x546   : > { %1544 = vadd.xlane.f32.xlu0 %v1543_v39  ;;  %v1657_v41 = vsel %vm1536_vm8, %v4030_v40, 0.0 }
 0x54a   : > { %1658 = vadd.xlane.f32.xlu0 %v1657_v41 }
 0x560   : > { %1813 = vrot.lane.b32.xlu0 %v4482_v4, %s4097_s2 }
 0x5d3   : > { %v1545_v42 = vpop.xlane.xlu0 %1544 }
 0x5d4   : > { %4031 = vrcp.f32 %v1545_v42  ;;  %v2136_v42 = vshrl.u32 %v4484_v9, 16 }
 0x5d7   : > { %v1659_v43 = vpop.xlane.xlu0 %1658 }
 0x5d8   : > { %4033 = vrcp.f32 %v1659_v43  ;;  %v2139_v43 = vshll.u32 %v4484_v9, 16 }
 0x5da   : > { %v2141_v45 = vrot.slane %v2139_v43, 3 }
 0x5db   : > { %v1814_v51 = vpop.permute.xlu0 %1813 }
 0x5dc   : > { %v1819_v53 = vsel %vm1489_vm5, %v1814_v51, 0 }
 0x5de   : > { %v4032_v44 = vpop.eup %4031 }
 0x5df   : > { %v1547_v46 = vmul.f32 %v4032_v44, %v4028_v37  ;;  %v2138_v44 = vrot.slane %v2136_v42, 2 }
 0x5e1   : > { %v1548_v47 = vpack.c.bf16 %v1547_v46, %v1547_v46  ;;  %v4580_v46 = vor.u32 %v2141_v45, %v2138_v44 }
 0x5e2   : > { %v4034_v48 = vpop.eup %4033 }
 0x5e3   : > { %3730 = vmatmul.mubr.msk.bf16.vlgmr.msra.gmra.mrb[8].mxu1 %vm1549_vm9, %v1548_v47  ;;  %v1661_v50 = vmul.f32 %v4034_v48, %v4030_v40  ;;  %v2204_v47 = vshrl.u32 %v4490_v10, 16  ;;  %v2207_v48 = vshll.u32 %v4490_v10, 16 }
 0x5e4   : > { %3740 = vmatpush3.bf16.msra.mxu1 %v1670_v49  ;;  %3741 = vmatprep.mubr.msk.bf16.mxu1 %vm4091_vm4, %v4090_v58 }
 0x5e5   : > { %3757 = vmatprep.subr.bf16.mxu1 %v4090_v58  ;;  %v1662_v52 = vpack.c.bf16 %v1661_v50, %v1661_v50 }
 0x5eb   : > { %3742 = vmatmul.mubr.msk.bf16.vlgmr.msra.gmra.mrb[12].mxu1 %vm1549_vm9, %v1662_v52  ;;  %v2206_v52 = vrot.slane %v2204_v47, 2 }
 0x5ec   : > { %3759 = vmatprep.mubr.msk.bf16.mxu1 %vm4091_vm4, %v4090_v58 }
 0x5ed   : > { %3758 = vmatpush3.bf16.xpose.msra.mxu1 %v1819_v53  ;;  %v2209_v53 = vrot.slane %v2207_v48, 3 }
 0x5ee   : > { %3763 = vmatprep.subr.bf16.mxu1 %v4090_v58 }
 0x5f4   : > { %3760 = vmatmul.mubr.msk.bf16.vlgmr.msra.gmra.mrb[16].mxu1 %vm1489_vm5, %v1812_v54 }
 0x5f5   : > { %3765 = vmatprep.mubr.msk.bf16.mxu1 %vm4091_vm4, %v4090_v58 }
 0x6b6   : > { %v1594_v56 = vpop.f32.mrb[8].mxu1 }
 0x6b7   : > { %v3731_v60 = vpop.f32.mrb[9].mxu1  ;;  %v1600_v14 = vpack.c.bf16 %v1594_v56, %v1594_v56  ;;  %v4590_v56 = vor.u32 %v2209_v53, %v2206_v52 }
 0x6b8   : > { %v1597_v62 = vpop.f32.mrb[10].mxu1 }
 0x6b9   : > { %v3732_v63 = vpop.f32.mrb[11].mxu1  ;;  %v2215_v60 = vand.u32 %v4590_v56, %v4500_v18 }
 0x6be   : > { %v1706_v0 = vpop.f32.mrb[12].mxu1 }
 0x6bf   : > { %v1712_v2 = vpack.c.bf16 %v1706_v0, %v1706_v0  ;;  %v3743_v3 = vpop.f32.mrb[13].mxu1 }
 0x6c0   : > { %v1709_v5 = vpop.f32.mrb[14].mxu1 }
 0x6c1   : > { %v3744_v6 = vpop.f32.mrb[15].mxu1  ;;  %3748 = vmatmul.mubr.msk.bf16.vlgmr.msra.gmra.mrb[4].mxu0 %vm1489_vm5, %v1712_v2 }
 0x6c2   : > { %3752 = vmatpush3.bf16.msra.mxu0 %v4541_v1  ;;  %3753 = vmatprep.mubr.msk.bf16.mxu0 %vm4091_vm4, %v4090_v58 }
 0x6c3   : > { %3769 = vmatprep.subr.bf16.mxu0 %v4090_v58 }
 0x6c7   : > { %v1855_v7 = vpop.f32.mrb[16].mxu1 }
 0x6c8   : > { %v3761_v8 = vpop.f32.mrb[17].mxu1  ;;  %v1861_v11 = vsel %vm1536_vm8, %v1855_v7, -inf }
 0x6c9   : > { %1862 = vmax.xlane.f32.xlu1 %v1861_v11  ;;  %v1858_v12 = vpop.f32.mrb[18].mxu1 }
 0x6ca   : > { %v3762_v13 = vpop.f32.mrb[19].mxu1 }
 0x6cb   : > { %v4615_v13 = vld [vmem:[%s4244_s24 + $0x18] sm:$0xff]  }
 0x6cd   : > { %3754 = vmatmul.mubr.msk.bf16.vlgmr.msra.gmra.mrb[4].mxu0 %vm1489_vm5, %v1600_v14 }
 0x6ce   : > { %3771 = vmatprep.mubr.msk.bf16.mxu0 %vm4091_vm4, %v4090_v58  ;;  %3770 = vmatpush3.bf16.msra.mxu0 %v4570_v30 }
 0x6cf   : > { %3781 = vmatprep.subr.bf16.mxu0 %v4090_v58 }
 0x6da   : > { %1974 = vrot.lane.b32.xlu1 %v4482_v4, %s4098_s25 }
 0x6de   : > { %1972 = vrot.lane.b32.xlu1 %v4482_v4, %s4099_s6 }
 0x756   : > { %v1863_v15 = vpop.xlane.xlu1 %1862 }
 0x757   : > { %v1864_v16 = vsub.f32 %v1855_v7, %v1863_v15 }
 0x759   : > { %v1865_v19 = vmul.f32 1.442695, %v1864_v16 }
 0x75a   : > { %v1975_v26 = vpop.permute.xlu1 %1974 }
 0x75b   : > { %4035 = vpow2.f32 %v1865_v19  ;;  %v1980_v28 = vsel %vm1489_vm5, %v1975_v26, 0 }
 0x75e   : > { %v1973_v29 = vpop.permute.xlu1 %1972 }
 0x765   : > { %v4036_v20 = vpop.eup %4035 }
 0x766   : > { %v1867_v21 = vsel %vm1536_vm8, %v4036_v20, 0.0 }
 0x767   : > { %1868 = vadd.xlane.f32.xlu0 %v1867_v21 }
 0x77d   : > { %1873 = vrot.lane.b32.xlu0 %v4498_v17, %s4096_s27 }
 0x7f4   : > { %v1869_v22 = vpop.xlane.xlu0 %1868 }
 0x7f5   : > { %4037 = vrcp.f32 %v1869_v22 }
 0x7f8   : > { %v1874_v23 = vpop.permute.xlu0 %1873 }
 0x7f9   : > { %v1879_v24 = vand.u32 %v1874_v23, %v4500_v18 }
 0x7fb   : > { %3764 = vmatpush3.bf16.msra.mxu1 %v1879_v24 }
 0x7fc   : > { %3775 = vmatprep.subr.bf16.mxu1 %v4090_v58 }
 0x7ff   : > { %v4038_v4 = vpop.eup %4037 }
 0x800   : > { %v1871_v25 = vmul.f32 %v4038_v4, %v4036_v20 }
 0x802   : > { %v1872_v27 = vpack.c.bf16 %v1871_v25, %v1871_v25 }
 0x804   : > { %3766 = vmatmul.mubr.msk.bf16.vlgmr.msra.gmra.mrb[20].mxu1 %vm1549_vm9, %v1872_v27 }
 0x805   : > { %3776 = vmatpush3.bf16.xpose.msra.mxu1 %v1980_v28  ;;  %3777 = vmatprep.mubr.msk.bf16.mxu1 %vm4091_vm4, %v4090_v58 }
 0x806   : > { %3793 = vmatprep.subr.bf16.mxu1 %v4090_v58 }
 0x80c   : > { %3778 = vmatmul.mubr.msk.bf16.vlgmr.msra.gmra.mrb[24].mxu1 %vm1489_vm5, %v1973_v29 }
 0x80d   : > { %3795 = vmatprep.mubr.msk.bf16.mxu1 %vm4091_vm4, %v4090_v58 }
 0x8d7   : > { %v1915_v31 = vpop.f32.mrb[20].mxu1 }
 0x8d8   : > { %v1921_v32 = vpack.c.bf16 %v1915_v31, %v1915_v31  ;;  %v3767_v33 = vpop.f32.mrb[21].mxu1 }
 0x8d9   : > { %v1918_v34 = vpop.f32.mrb[22].mxu1 }
 0x8da   : > { %v3768_v35 = vpop.f32.mrb[23].mxu1  ;;  %3772 = vmatmul.mubr.msk.bf16.vlgmr.msra.gmra.mrb[4].mxu0 %vm1489_vm5, %v1921_v32 }
 0x8db   : > { %3783 = vmatprep.mubr.msk.bf16.mxu0 %vm4091_vm4, %v4090_v58 }
 0x8df   : > { %v2016_v36 = vpop.f32.mrb[24].mxu1 }
 0x8e0   : > { %v3779_v37 = vpop.f32.mrb[25].mxu1  ;;  %v2022_v39 = vsel %vm1536_vm8, %v2016_v36, -inf }
 0x8e1   : > { %2023 = vmax.xlane.f32.xlu1 %v2022_v39  ;;  %v2019_v40 = vpop.f32.mrb[26].mxu1 }
 0x8e2   : > { %v3780_v41 = vpop.f32.mrb[27].mxu1 }
 0x8f2   : > { %2143 = vrot.lane.b32.xlu1 %v4580_v46, %s4093_s16 }
 0x8f6   : > { %2260 = vrot.lane.b32.xlu1 %v4580_v46, %s4092_s0 }
 0x96e   : > { %v2024_v49 = vpop.xlane.xlu1 %2023 }
 0x96f   : > { %v2025_v50 = vsub.f32 %v2016_v36, %v2024_v49 }
 0x971   : > { %v2026_v51 = vmul.f32 1.442695, %v2025_v50 }
 0x972   : > { %v2144_v9 = vpop.permute.xlu1 %2143 }
 0x973   : > { %4039 = vpow2.f32 %v2026_v51  ;;  %v2149_v54 = vsel %vm1489_vm5, %v2144_v9, 0 }
 0x974   : > { %3794 = vmatpush3.bf16.xpose.msra.mxu1 %v2149_v54 }
 0x975   : > { %3799 = vmatprep.subr.bf16.mxu1 %v4090_v58 }
 0x976   : > { %v2261_v14 = vpop.permute.xlu1 %2260 }
 0x977   : > { %v2266_v21 = vsel %vm1489_vm5, %v2261_v14, 0 }
 0x97b   : > { %3796 = vmatmul.mubr.msk.bf16.vlgmr.msra.gmra.mrb[28].mxu1 %vm1489_vm5, %v4580_v46 }
 0x97c   : > { %3800 = vmatpush3.bf16.msra.mxu1 %v2215_v60  ;;  %3801 = vmatprep.mubr.msk.bf16.mxu1 %vm4091_vm4, %v4090_v58 }
 0x97d   : > { %v4040_v10 = vpop.eup %4039  ;;  %3811 = vmatprep.subr.bf16.mxu1 %v4090_v58 }
 0x97e   : > { %v2028_v62 = vsel %vm1536_vm8, %v4040_v10, 0.0 }
 0x97f   : > { %2029 = vadd.xlane.f32.xlu0 %v2028_v62 }
 0x995   : > { %2034 = vrot.lane.b32.xlu0 %v4498_v17, %s4099_s6 }
 0x999   : > { %2258 = vrot.lane.b32.xlu0 %v4580_v46, %s4094_s19 }
 0xa0c   : > { %v2030_v63 = vpop.xlane.xlu0 %2029 }
 0xa0d   : > { %4041 = vrcp.f32 %v2030_v63 }
 0xa10   : > { %v2035_v0 = vpop.permute.xlu0 %2034 }
 0xa11   : > { %v2040_v2 = vand.u32 %v2035_v0, %v4500_v18 }
 0xa13   : > { %3782 = vmatpush3.bf16.msra.mxu0 %v2040_v2 }
 0xa14   : > { %3787 = vmatprep.subr.bf16.mxu0 %v4090_v58  ;;  %v2259_v23 = vpop.permute.xlu0 %2258 }
 0xa17   : > { %v4042_v3 = vpop.eup %4041 }
 0xa18   : > { %v2032_v5 = vmul.f32 %v4042_v3, %v4040_v10 }
 0xa1a   : > { %v2033_v6 = vpack.c.bf16 %v2032_v5, %v2032_v5 }
 0xa1c   : > { %3784 = vmatmul.mubr.msk.bf16.vlgmr.msra.gmra.mrb[8].mxu0 %vm1549_vm9, %v2033_v6 }
 0xa1d   : > { %3789 = vmatprep.mubr.msk.bf16.mxu0 %vm4091_vm4, %v4090_v58  ;;  %3788 = vmatpush3.bf16.msra.mxu0 %v4615_v13 }
 0xa1e   : > { %3805 = vmatprep.subr.bf16.mxu0 %v4090_v58 }
 0xa4e   : > { %v2185_v17 = vpop.f32.mrb[28].mxu1 }
 0xa4f   : > { %v3797_v7 = vpop.f32.mrb[29].mxu1  ;;  %v2191_v8 = vsel %vm1536_vm8, %v2185_v17, -inf }
 0xa50   : > { %2192 = vmax.xlane.f32.xlu1 %v2191_v8  ;;  %v2188_v11 = vpop.f32.mrb[30].mxu1 }
 0xa51   : > { %v3798_v12 = vpop.f32.mrb[31].mxu1 }
 0xa61   : > { %2320 = vrot.lane.b32.xlu1 %v4590_v56, %s4094_s19 }
 0xa65   : > { %2455 = vrot.lane.b32.xlu1 %v4580_v46, %s4096_s27 }
 0xadd   : > { %v2193_v24 = vpop.xlane.xlu1 %2192 }
 0xade   : > { %v2194_v4 = vsub.f32 %v2185_v17, %v2193_v24 }
 0xae0   : > { %v2195_v25 = vmul.f32 1.442695, %v2194_v4 }
 0xae1   : > { %v2321_v45 = vpop.permute.xlu1 %2320 }
 0xae2   : > { %4043 = vpow2.f32 %v2195_v25  ;;  %v2326_v49 = vand.u32 %v2321_v45, %v4500_v18 }
 0xae5   : > { %v2456_v60 = vpop.permute.xlu1 %2455 }
 0xaec   : > { %v4044_v34 = vpop.eup %4043 }
 0xaed   : > { %v2197_v36 = vsel %vm1536_vm8, %v4044_v34, 0.0 }
 0xaef   : > { %v2076_v15 = vpop.f32.mrb[8].mxu0 }
 0xaf0   : > { %v2082_v16 = vpack.c.bf16 %v2076_v15, %v2076_v15  ;;  %v3785_v19 = vpop.f32.mrb[9].mxu0 }
 0xaf1   : > { %v2079_v20 = vpop.f32.mrb[10].mxu0 }
 0xaf2   : > { %v3786_v22 = vpop.f32.mrb[11].mxu0  ;;  %3790 = vmatmul.mubr.msk.bf16.vlgmr.msra.gmra.mrb[4].mxu0 %vm1489_vm5, %v2082_v16 }
 0xaf3   : > { %3806 = vmatpush3.bf16.xpose.msra.mxu0 %v2266_v21  ;;  %3807 = vmatprep.mubr.msk.bf16.mxu0 %vm4091_vm4, %v4090_v58 }
 0xaf4   : > { %3817 = vmatprep.subr.bf16.mxu0 %v4090_v58 }
 0xafa   : > { %3808 = vmatmul.mubr.msk.bf16.vlgmr.msra.gmra.mrb[12].mxu0 %vm1489_vm5, %v2259_v23 }
 0xafb   : > { %3818 = vmatpush3.bf16.msra.mxu0 %v4536_v55  ;;  %3819 = vmatprep.mubr.msk.bf16.mxu0 %vm4091_vm4, %v4090_v58 }
 0xafc   : > { %3823 = vmatprep.subr.bf16.mxu0 %v4090_v58 }
 0xbc5   : > { %v4629_v26 = vpop.f32.mrb[4].mxu0 }
 0xbc6   : > { %v3791_v27 = vpop.f32.mrb[5].mxu0 }
 0xbc7   : > { %v2129_v28 = vpop.f32.mrb[6].mxu0 }
 0xbc8   : > { %v3792_v29 = vpop.f32.mrb[7].mxu0 }
 0xbcd   : > { %v2302_v31 = vpop.f32.mrb[12].mxu0 }
 0xbce   : > { %v3809_v32 = vpop.f32.mrb[13].mxu0  ;;  %v2308_v33 = vsel %vm1536_vm8, %v2302_v31, -inf }
 0xbcf   : > { %2309 = vmax.xlane.f32.xlu0 %v2308_v33  ;;  %v2305_v55 = vpop.f32.mrb[14].mxu0 }
 0xbd0   : > { %v3810_v35 = vpop.f32.mrb[15].mxu0 }
 0xbd3   : > { %2198 = vadd.xlane.f32.xlu0 %v2197_v36 }
 0xc5c   : > { %v2310_v37 = vpop.xlane.xlu0 %2309 }
 0xc5d   : > { %v2311_v39 = vsub.f32 %v2302_v31, %v2310_v37 }
 0xc5f   : > { %v2312_v40 = vmul.f32 1.442695, %v2311_v39 }
 0xc60   : > { %v2199_v41 = vpop.xlane.xlu0 %2198 }
 0xc61   : > { %4045 = vpow2.f32 %v2312_v40 }
 0xc62   : > { %4047 = vrcp.f32 %v2199_v41 }
 0xc6b   : > { %v4046_v42 = vpop.eup %4045 }
 0xc6c   : > { %v4048_v43 = vpop.eup %4047  ;;  %v2314_v44 = vsel %vm1536_vm8, %v4046_v42, 0.0 }
 0xc6d   : > { %v2201_v47 = vmul.f32 %v4048_v43, %v4044_v34  ;;  %2315 = vadd.xlane.f32.xlu0 %v2314_v44 }
 0xc6f   : > { %v2202_v48 = vpack.c.bf16 %v2201_v47, %v2201_v47 }
 0xc71   : > { %3802 = vmatmul.mubr.msk.bf16.vlgmr.msra.gmra.mrb[32].mxu1 %vm1549_vm9, %v2202_v48 }
 0xc72   : > { %3812 = vmatpush3.bf16.msra.mxu1 %v2326_v49  ;;  %3813 = vmatprep.mubr.msk.bf16.mxu1 %vm4091_vm4, %v4090_v58 }
 0xc73   : > { %3829 = vmatprep.subr.bf16.mxu1 %v4090_v58 }
 0xc83   : > { %2457 = vrot.lane.b32.xlu0 %v4580_v46, %s4097_s2 }
 0xcfa   : > { %v2316_v50 = vpop.xlane.xlu0 %2315 }
 0xcfb   : > { %4049 = vrcp.f32 %v2316_v50 }
 0xcfe   : > { %v2458_v53 = vpop.permute.xlu0 %2457 }
 0xcff   : > { %v2463_v54 = vsel %vm1489_vm5, %v2458_v53, 0 }
 0xd05   : > { %v4050_v51 = vpop.eup %4049 }
 0xd06   : > { %v2318_v52 = vmul.f32 %v4050_v51, %v4046_v42 }
 0xd08   : > { %v2319_v9 = vpack.c.bf16 %v2318_v52, %v2318_v52 }
 0xd0a   : > { %3814 = vmatmul.mubr.msk.bf16.vlgmr.msra.gmra.mrb[36].mxu1 %vm1549_vm9, %v2319_v9 }
 0xd0b   : > { %3830 = vmatpush3.bf16.xpose.msra.mxu1 %v2463_v54  ;;  %3831 = vmatprep.mubr.msk.bf16.mxu1 %vm4091_vm4, %v4090_v58 }
 0xd0c   : > { %3835 = vmatprep.subr.bf16.mxu1 %v4090_v58 }
 0xd12   : > { %3832 = vmatmul.mubr.msk.bf16.vlgmr.msra.gmra.mrb[40].mxu1 %vm1489_vm5, %v2456_v60 }
 0xd13   : > { %3837 = vmatprep.mubr.msk.bf16.mxu1 %vm4091_vm4, %v4090_v58 }
 0xd44   : > { %v2251_v10 = vpop.f32.mrb[32].mxu1 }
 0xd45   : > { %v3803_v62 = vpop.f32.mrb[33].mxu1  ;;  %v2257_v15 = vpack.c.bf16 %v2251_v10, %v2251_v10 }
 0xd46   : > { %v2254_v63 = vpop.f32.mrb[34].mxu1 }
 0xd47   : > { %v3804_v0 = vpop.f32.mrb[35].mxu1  ;;  %v4071_v63 = vld [vmem:[#allocation2] sm:$0xff] }
 0xddd   : > { %v2362_v2 = vpop.f32.mrb[36].mxu1 }
 0xdde   : > { %v2368_v3 = vpack.c.bf16 %v2362_v2, %v2362_v2  ;;  %v3815_v5 = vpop.f32.mrb[37].mxu1  ;;  %v4072_v2 = vld [vmem:[#allocation2 + $0x8] sm:$0x3] }
 0xddf   : > { %v2365_v6 = vpop.f32.mrb[38].mxu1 }
 0xde0   : > { %v3816_v17 = vpop.f32.mrb[39].mxu1  ;;  %3820 = vmatmul.mubr.msk.bf16.vlgmr.msra.gmra.mrb[16].mxu0 %vm1489_vm5, %v2368_v3 }
 0xde1   : > { %3824 = vmatpush3.bf16.msra.mxu0 %v4541_v1  ;;  %3825 = vmatprep.mubr.msk.bf16.mxu0 %vm4091_vm4, %v4090_v58 }
 0xde2   : > { %3841 = vmatprep.subr.bf16.mxu0 %v4090_v58 }
 0xde5   : > { %v2499_v7 = vpop.f32.mrb[40].mxu1 }
 0xde6   : > { %v3833_v8 = vpop.f32.mrb[41].mxu1  ;;  %v2505_v11 = vsel %vm1536_vm8, %v2499_v7, -inf }
 0xde7   : > { %2506 = vmax.xlane.f32.xlu1 %v2505_v11  ;;  %v2502_v12 = vpop.f32.mrb[42].mxu1 }
 0xde8   : > { %v3834_v14 = vpop.f32.mrb[43].mxu1 }
 0xdec   : > { %3826 = vmatmul.mubr.msk.bf16.vlgmr.msra.gmra.mrb[16].mxu0 %vm1489_vm5, %v2257_v15 }
 0xded   : > { %3842 = vmatpush3.bf16.msra.mxu0 %v4570_v30  ;;  %3843 = vmatprep.mubr.msk.bf16.mxu0 %vm4091_vm4, %v4090_v58 }
 0xdee   : > { %3853 = vmatprep.subr.bf16.mxu0 %v4090_v58 }
 0xdf8   : > { %2612 = vrot.lane.b32.xlu1 %v4580_v46, %s4098_s25 }
 0xdfc   : > { %2610 = vrot.lane.b32.xlu1 %v4580_v46, %s4099_s6 }
 0xe74   : > { %v2507_v1 = vpop.xlane.xlu1 %2506 }
 0xe75   : > { %v2508_v16 = vsub.f32 %v2499_v7, %v2507_v1 }
 0xe77   : > { %v2509_v19 = vmul.f32 1.442695, %v2508_v16 }
 0xe78   : > { %v2613_v4 = vpop.permute.xlu1 %2612 }
 0xe79   : > { %4051 = vpow2.f32 %v2509_v19  ;;  %v2618_v27 = vsel %vm1489_vm5, %v2613_v4, 0  ;;  %v4006_v4 = vld [vmem:[%s4257_s17 + $0x34] ss:$8 sps:$4 sm:$0xff]  }
 0xe7c   : > { %v2611_v28 = vpop.permute.xlu1 %2610 }
 0xe83   : > { %v4052_v20 = vpop.eup %4051 }
 0xe84   : > { %v2511_v21 = vsel %vm1536_vm8, %v4052_v20, 0.0 }
 0xe85   : > { %2512 = vadd.xlane.f32.xlu0 %v2511_v21  ;;  %v3997_v21 = vld [vmem:[%s4257_s17 + $0x4] ss:$8 sps:$4 sm:$0xff]  }
 0xe9b   : > { %2517 = vrot.lane.b32.xlu0 %v4590_v56, %s4096_s27 }
 0xf12   : > { %v2513_v30 = vpop.xlane.xlu0 %2512 }
 0xf13   : > { %4053 = vrcp.f32 %v2513_v30  ;;  %v3995_v30 = vld [vmem:[%s4257_s17] ss:$8 sps:$4 sm:$0xff]  }
 0xf16   : > { %v2518_v22 = vpop.permute.xlu0 %2517 }
 0xf17   : > { %v2523_v23 = vand.u32 %v2518_v22, %v4500_v18  ;;  %v4000_v22 = vld [vmem:[%s4257_s17 + $0x14] ss:$8 sps:$4 sm:$0xff]  }
 0xf19   : > { %3836 = vmatpush3.bf16.msra.mxu1 %v2523_v23  ;;  %v3998_v23 = vld [vmem:[%s4257_s17 + $0x10] ss:$8 sps:$4 sm:$0xff]  }
 0xf1a   : > { %3847 = vmatprep.subr.bf16.mxu1 %v4090_v58 }
 0xf1d   : > { %v4054_v46 = vpop.eup %4053 }
 0xf1e   : > { %v2515_v24 = vmul.f32 %v4054_v46, %v4052_v20  ;;  %v4003_v46 = vld [vmem:[%s4257_s17 + $0x24] ss:$8 sps:$4 sm:$0xff]  }
 0xf20   : > { %v2516_v25 = vpack.c.bf16 %v2515_v24, %v2515_v24  ;;  %v4001_v24 = vld [vmem:[%s4257_s17 + $0x20] ss:$8 sps:$4 sm:$0xff]  }
 0xf22   : > { %3838 = vmatmul.mubr.msk.bf16.vlgmr.msra.gmra.mrb[44].mxu1 %vm1549_vm9, %v2516_v25  ;;  %v4004_v25 = vld [vmem:[%s4257_s17 + $0x30] ss:$8 sps:$4 sm:$0xff]   ;;  %s4840_s17 = scalar_lea.vmem %s4801_s9, %s4214_s20  ;;  %s4845_s20 = sld [smem:[#allocation14_spill]] (!%p3565_p5) }
 0xf23   : > { %3848 = vmatpush3.bf16.xpose.msra.mxu1 %v2618_v27  ;;  %3849 = vmatprep.mubr.msk.bf16.mxu1 %vm4091_vm4, %v4090_v58 }
 0xf24   : > { %2889 = vmatprep.subr.bf16.mxu1 %v3997_v21 }
 0xf2a   : > { %3850 = vmatmul.mubr.msk.bf16.vlgmr.msra.gmra.mrb[48].mxu1 %vm1489_vm5, %v2611_v28 }
 0xf2b   : > { %2921 = vmatprep.mubr.bf16.mxu1 %v4089_v38  ;;  %2890 = vmatpush1.bf16.msra.mxu1 %v3995_v30 }
 0xf2c   : > { %2891 = vmatprep.subr.bf16.mxu1 %v4000_v22 }
 0xf2f   : > { %2892 = vmatpush1.bf16.msra.mxu1 %v3998_v23 }
 0xf30   : > { %2893 = vmatprep.subr.bf16.mxu1 %v4003_v46 }
 0xf33   : > { %2894 = vmatpush1.bf16.msra.mxu1 %v4001_v24 }
 0xf34   : > { %2895 = vmatprep.subr.bf16.mxu1 %v4006_v4 }
 0xf37   : > { %2896 = vmatpush1.bf16.msra.mxu1 %v4004_v25 }
 0xff5   : > { %v2559_v29 = vpop.f32.mrb[44].mxu1 }
 0xff6   : > { %v2565_v31 = vpack.c.bf16 %v2559_v29, %v2559_v29  ;;  %v3839_v32 = vpop.f32.mrb[45].mxu1 }
 0xff7   : > { %v2562_v33 = vpop.f32.mrb[46].mxu1 }
 0xff8   : > { %v3840_v34 = vpop.f32.mrb[47].mxu1  ;;  %3844 = vmatmul.mubr.msk.bf16.vlgmr.msra.gmra.mrb[16].mxu0 %vm1489_vm5, %v2565_v31 }
 0xff9   : > { %3855 = vmatprep.mubr.msk.bf16.mxu0 %vm4091_vm4, %v4090_v58 }
 0xffd   : > { %v2654_v55 = vpop.f32.mrb[48].mxu1 }
 0xffe   : > { %v3851_v35 = vpop.f32.mrb[49].mxu1  ;;  %v2660_v36 = vsel %vm1536_vm8, %v2654_v55, -inf }
 0xfff   : > { %2661 = vmax.xlane.f32.xlu1 %v2660_v36  ;;  %v2657_v37 = vpop.f32.mrb[50].mxu1  ;;  %v3537_v35 = vld [vmem:[%s4840_s17] ss:$0 sm:$0xff]  ;;  %s4843_s17 = sld [smem:[#allocation11_spill]] (!%p3565_p5) }
0x1000   : > { %v3852_v39 = vpop.f32.mrb[51].mxu1 }
0x108c   : > { %v2662_v40 = vpop.xlane.xlu1 %2661 }
0x108d   : > { %v2663_v41 = vsub.f32 %v2654_v55, %v2662_v40  ;;  %v3538_v40 = vld [vmem:[%s748_s21] ss:$0 sm:$0xff] }
0x108f   : > { %v2664_v38 = vmul.f32 1.442695, %v2663_v41 }
0x1091   : > { %4055 = vpow2.f32 %v2664_v38 }
0x109b   : > { %v4056_v42 = vpop.eup %4055 }
0x109c   : > { %v2666_v43 = vsel %vm1536_vm8, %v4056_v42, 0.0 }
0x109d   : > { %2667 = vadd.xlane.f32.xlu0 %v2666_v43 }
0x10b3   : > { %2672 = vrot.lane.b32.xlu0 %v4590_v56, %s4099_s6 }
0x112a   : > { %v2668_v44 = vpop.xlane.xlu0 %2667 }
0x112b   : > { %4057 = vrcp.f32 %v2668_v44  ;;  %v4007_v44 = vld [vmem:[%s4268_s15 + $0x40] sm:$0xff]  }
0x112e   : > { %v2673_v45 = vpop.permute.xlu0 %2672 }
0x112f   : > { %v2678_v47 = vand.u32 %v2673_v45, %v4500_v18  ;;  %v4008_v45 = vld [vmem:[%s4268_s15] sm:$0xff]  }
0x1131   : > { %3854 = vmatpush3.bf16.msra.mxu0 %v2678_v47  ;;  %v4009_v47 = vld [vmem:[%s4268_s15 + $0x48] sm:$0xff]  }
0x1132   : > { %3859 = vmatprep.subr.bf16.mxu0 %v4090_v58 }
0x1135   : > { %v4058_v48 = vpop.eup %4057 }
0x1136   : > { %v2670_v49 = vmul.f32 %v4058_v48, %v4056_v42  ;;  %v4010_v48 = vld [vmem:[%s4268_s15 + $0x8] sm:$0xff]  }
0x1138   : > { %v2671_v50 = vpack.c.bf16 %v2670_v49, %v2670_v49  ;;  %v4011_v49 = vld [vmem:[%s4268_s15 + $0x50] sm:$0xff]  }
0x113a   : > { %3856 = vmatmul.mubr.msk.bf16.vlgmr.msra.gmra.mrb[20].mxu0 %vm1549_vm9, %v2671_v50  ;;  %v4012_v50 = vld [vmem:[%s4268_s15 + $0x10] sm:$0xff]  }
0x113b   : > { %3860 = vmatpush3.bf16.msra.mxu0 %v4615_v13  ;;  %3861 = vmatprep.mubr.msk.bf16.mxu0 %vm4091_vm4, %v4090_v58  ;;  %v3536_v13 = vld [vmem:[%s4839_s3] ss:$0 sm:$0xff]  ;;  %s4842_s3 = sld [smem:[#allocation10_spill]] (!%p3565_p5) }
0x113c   : > { %3694 = vmatprep.subr.bf16.mxu0 %v4007_v44 }
0x120d   : > { %v2714_v56 = vpop.f32.mrb[20].mxu0 }
0x120e   : > { %v2720_v51 = vpack.c.bf16 %v2714_v56, %v2714_v56  ;;  %v3857_v52 = vpop.f32.mrb[21].mxu0  ;;  %v4013_v56 = vld [vmem:[%s4268_s15 + $0x58] sm:$0xff]  }
0x120f   : > { %v2717_v53 = vpop.f32.mrb[22].mxu0  ;;  %v4015_v52 = vld [vmem:[%s4268_s15 + $0x60] sm:$0xff]  }
0x1210   : > { %v3858_v9 = vpop.f32.mrb[23].mxu0  ;;  %3862 = vmatmul.mubr.msk.bf16.vlgmr.msra.gmra.mrb[16].mxu0 %vm1489_vm5, %v2720_v51  ;;  %v4014_v51 = vld [vmem:[%s4268_s15 + $0x18] sm:$0xff]   ;;  %v4016_v53 = vld [vmem:[%s4268_s15 + $0x20] sm:$0xff]  }
0x1211   : > { %3695 = vmatpush3.bf16.msra.mxu0 %v4008_v45  ;;  %v4017_v9 = vld [vmem:[%s4268_s15 + $0x68] sm:$0xff]  }
0x1212   : > { %3696 = vmatprep.subr.bf16.mxu0 %v4009_v47 }
0x1215   : > { %3697 = vmatpush3.bf16.msra.mxu0 %v4010_v48 }
0x1216   : > { %3698 = vmatprep.subr.bf16.mxu0 %v4011_v49  ;;  %v3548_v49 = vld [vmem:[%s765_s5] ss:$0 sm:$0xff] }
0x1219   : > { %3699 = vmatpush3.bf16.msra.mxu0 %v4012_v50 }
0x121a   : > { %3700 = vmatprep.subr.bf16.mxu0 %v4013_v56 }
0x121d   : > { %3701 = vmatpush3.bf16.msra.mxu0 %v4014_v51 }
0x121e   : > { %3702 = vmatprep.subr.bf16.mxu0 %v4015_v52 }
0x1221   : > { %3703 = vmatpush3.bf16.msra.mxu0 %v4016_v53 }
0x1222   : > { %3704 = vmatprep.subr.bf16.mxu0 %v4017_v9 }
0x12e3   : > { %v2758_v18 = vpop.f32.mrb[16].mxu0 }
0x12e4   : > { %v2766_v54 = vrot.slane %v2758_v18, 3  ;;  %v3863_v60 = vpop.f32.mrb[17].mxu0  ;;  %v4018_v18 = vld [vmem:[%s4268_s15 + $0x28] sm:$0xff]  }
0x12e5   : > { %v2761_v10 = vpop.f32.mrb[18].mxu0  ;;  %3705 = vmatpush3.bf16.msra.mxu0 %v4018_v18  ;;  %v4020_v60 = vld [vmem:[%s4268_s15 + $0x30] sm:$0xff]  }
0x12e6   : > { %v2769_v62 = vsel %vm2768_vm10, %v4629_v26, %v2766_v54  ;;  %v3864_v58 = vpop.f32.mrb[19].mxu0  ;;  %v2771_v3 = vadd.f32 %v4072_v2, %v2766_v54  ;;  %v4019_v54 = vld [vmem:[%s4268_s15 + $0x70] sm:$0xff]   ;;  %v4021_v10 = vld [vmem:[%s4268_s15 + $0x78] sm:$0xff]  }
0x12e7   : > { %v2770_v0 = vadd.f32 %v4071_v63, %v2769_v62  ;;  %3706 = vmatprep.subr.bf16.mxu0 %v4019_v54  ;;  %v4022_v62 = vld [vmem:[%s4268_s15 + $0x38] sm:$0xff]   ;;  %s4841_s15 = sld [smem:[#allocation12_spill]] (!%p3565_p5) }
0x12e8   : > { %v4697_v6 = vadd.f32 %v3536_v13, %v2771_v3 }
0x12e9   : > { %v4695_v5 = vadd.f32 %v3536_v13, %v2770_v0  ;;  %3707 = vmatpush3.bf16.msra.mxu0 %v4020_v60  ;;  %v2834_v13 = vld [vmem:[%s4262_s22] sm:$0x3]  ;;  %s4844_s22 = sld [smem:[#allocation13_spill]] (!%p3565_p5) }
0x12ea   : > { %v2786_v26 = vsel %vm1328_vm3, %v4697_v6, 0.0  ;;  %3708 = vmatprep.subr.bf16.mxu0 %v4021_v10  ;;  %v2839_v58 = vrot.slane %v2834_v13, %v1382_v59  ;;  %v2843_v63 = vrot.slane %v2834_v13, %v1386_v61 }
0x12eb   : > { %v2783_v17 = vsel %vm1324_vm2, %v4695_v5, 0.0 }
0x12ec   : > { %2784 = vadd.xlane.f32.xlu1 %v2783_v17 }
0x12ed   : > { %3709 = vmatpush3.bf16.msra.mxu0 %v4022_v62 }
0x12f0   : > { %2787 = vadd.xlane.f32.xlu1 %v2786_v26 }
0x1379   : > { %v2785_v7 = vpop.xlane.xlu1 %2784 }
0x137a   : > { %v2789_v8 = vmul.f32 0.015625, %v2785_v7 }
0x137c   : > { %v2791_v11 = vsub.f32 %v4695_v5, %v2789_v8 }
0x137d   : > { %v2788_v12 = vpop.xlane.xlu1 %2787 }
0x137e   : > { %v2790_v14 = vmul.f32 0.015625, %v2788_v12  ;;  %v2793_v15 = vmul.f32 %v2791_v11, %v2791_v11 }
0x1380   : > { %v2792_v1 = vsub.f32 %v4697_v6, %v2790_v14  ;;  %v2795_v16 = vsel %vm1324_vm2, %v2793_v15, 0.0 }
0x1381   : > { %2796 = vadd.xlane.f32.xlu1 %v2795_v16 }
0x1382   : > { %v2794_v19 = vmul.f32 %v2792_v1, %v2792_v1 }
0x1384   : > { %v2798_v20 = vsel %vm1328_vm3, %v2794_v19, 0.0 }
0x1385   : > { %2799 = vadd.xlane.f32.xlu1 %v2798_v20 }
0x140e   : > { %v2797_v27 = vpop.xlane.xlu1 %2796 }
0x140f   : > { %v2801_v28 = vmul.f32 0.015625, %v2797_v27 }
0x1411   : > { %v2803_v29 = vadd.f32 1e-05, %v2801_v28 }
0x1412   : > { %v2800_v31 = vpop.xlane.xlu1 %2799 }
0x1413   : > { %4059 = vrsqrt.f32 %v2803_v29  ;;  %v2802_v32 = vmul.f32 0.015625, %v2800_v31 }
0x1415   : > { %v2804_v33 = vadd.f32 1e-05, %v2802_v32 }
0x1417   : > { %4061 = vrsqrt.f32 %v2804_v33 }
0x141d   : > { %v4060_v34 = vpop.eup %4059 }
0x141e   : > { %v2807_v55 = vmul.f32 %v4060_v34, %v2791_v11 }
0x1420   : > { %v2815_v37 = vmul.f32 %v3537_v35, %v2807_v55 }
0x1421   : > { %v4062_v36 = vpop.eup %4061 }
0x1422   : > { %v2808_v39 = vmul.f32 %v4062_v36, %v2792_v1  ;;  %v2823_v38 = vadd.f32 %v3538_v40, %v2815_v37 }
0x1424   : > { %v2816_v41 = vmul.f32 %v3537_v35, %v2808_v39 }
0x1426   : > { %v2824_v42 = vadd.f32 %v3538_v40, %v2816_v41 }
0x1428   : > { %v2825_v43 = vpack.c.bf16 %v2824_v42, %v2823_v38 }
0x142a   : > { %3547 = vmatmul.mubr.msk.bf16.vlgmr.msra.gmra.mrb[52].mxu1 %vm1324_vm2, %v2825_v43 }
0x14fd   : > { %v2923_v0 = vpop.f32.mrb[52].mxu1 }
0x14fe   : > { %v2924_v2 = vadd.f32 %v2923_v0, %v2839_v58  ;;  %v2925_v3 = vpop.f32.mrb[53].mxu1 }
0x14ff   : > { %v2926_v17 = vadd.f32 %v2925_v3, %v2843_v63  ;;  %v2927_v26 = vpop.f32.mrb[54].mxu1 }
0x1500   : > { %v2936_v7 = vmul.f32 0.044715, %v2924_v2  ;;  %v2928_v8 = vadd.f32 %v2927_v26, %v2839_v58  ;;  %v2929_v11 = vpop.f32.mrb[55].mxu1  ;;  %v2932_v35 = vmul.f32 0.5, %v2924_v2 }
0x1501   : > { %v2937_v12 = vmul.f32 0.044715, %v2926_v17  ;;  %v2930_v14 = vadd.f32 %v2929_v11, %v2843_v63  ;;  %v2933_v39 = vmul.f32 0.5, %v2926_v17  ;;  %v4073_v11 = vld [vmem:[%s4841_s15] sm:$0xff] (!%p3565_p5)  }
0x1502   : > { %v2940_v15 = vmul.f32 %v2936_v7, %v2924_v2  ;;  %v2938_v1 = vmul.f32 0.044715, %v2928_v8  ;;  %v2934_v36 = vmul.f32 0.5, %v2928_v8 }
0x1503   : > { %v2941_v16 = vmul.f32 %v2937_v12, %v2926_v17  ;;  %v2939_v19 = vmul.f32 0.044715, %v2930_v14  ;;  %v2935_v40 = vmul.f32 0.5, %v2930_v14  ;;  %v4100_v12 = vmov (!%p3565_p5), 0.0  }
0x1504   : > { %v2944_v20 = vmul.f32 %v2940_v15, %v2924_v2  ;;  %v2942_v21 = vmul.f32 %v2938_v1, %v2928_v8  ;;  %3865 = vmatprep.subr.bf16.mxu0 (!%p3565_p5), %v4100_v12  ;;  %v4075_v15 = vld [vmem:[%s4841_s15 + $0x10] sm:$0xff] (!%p3565_p5)   ;;  %v4076_v1 = vld [vmem:[%s4841_s15 + $0x18] sm:$0xff] (!%p3565_p5)  }
0x1505   : > { %v2945_v59 = vmul.f32 %v2941_v16, %v2926_v17  ;;  %v2943_v30 = vmul.f32 %v2939_v19, %v2930_v14 }
0x1506   : > { %v2948_v57 = vadd.f32 %v2944_v20, %v2924_v2  ;;  %v2946_v61 = vmul.f32 %v2942_v21, %v2928_v8 }
0x1507   : > { %v2947_v22 = vmul.f32 %v2943_v30, %v2930_v14  ;;  %v2949_v23 = vadd.f32 %v2945_v59, %v2926_v17 }
0x1508   : > { %v2952_v46 = vmul.f32 0.7978846, %v2948_v57  ;;  %v2950_v24 = vadd.f32 %v2946_v61, %v2928_v8 }
0x1509   : > { %v2951_v4 = vadd.f32 %v2947_v22, %v2930_v14  ;;  %v2953_v25 = vmul.f32 0.7978846, %v2949_v23  ;;  %v4074_v14 = vld [vmem:[%s4841_s15 + $0x8] sm:$0xff] (!%p3565_p5)   ;;  %v3566_v22 = vld [vmem:[%s4842_s3] ss:$0 sm:$0xff] (!%p3565_p5) }
0x150a   : > { %4063 = vtanh.f32 %v2952_v46  ;;  %v2954_v27 = vmul.f32 0.7978846, %v2950_v24 }
0x150b   : > { %v2955_v28 = vmul.f32 0.7978846, %v2951_v4  ;;  %4065 = vtanh.f32 %v2953_v25  ;;  %v3567_v4 = vld [vmem:[%s4843_s17] ss:$0 sm:$0xff] (!%p3565_p5) }
0x150c   : > { %4067 = vtanh.f32 %v2954_v27 }
0x150d   : > { %4069 = vtanh.f32 %v2955_v28 }
0x1514   : > { %v4064_v29 = vpop.eup %4063 }
0x1515   : > { %v4066_v31 = vpop.eup %4065  ;;  %v2960_v32 = vadd.f32 1.0, %v4064_v29 }
0x1516   : > { %v4068_v33 = vpop.eup %4067  ;;  %v2961_v34 = vadd.f32 1.0, %v4066_v31  ;;  %v3568_v31 = vld [vmem:[%s4844_s22] ss:$0 sm:$0xff] (!%p3565_p5) }
0x1517   : > { %v4070_v55 = vpop.eup %4069  ;;  %v2962_v37 = vadd.f32 1.0, %v4068_v33  ;;  %v2964_v38 = vmul.f32 %v2960_v32, %v2932_v35 }
0x1518   : > { %v2963_v41 = vadd.f32 1.0, %v4070_v55  ;;  %v2965_v43 = vmul.f32 %v2961_v34, %v2933_v39 }
0x1519   : > { %v2966_v42 = vmul.f32 %v2962_v37, %v2934_v36 }
0x151a   : > { %v2967_v44 = vmul.f32 %v2963_v41, %v2935_v40 }
0x151b   : > { %v2968_v45 = vpack.c.bf16 %v2966_v42, %v2964_v38 }
0x151c   : > { %v2969_v47 = vpack.c.bf16 %v2967_v44, %v2965_v43 }
0x151e   : > { %3137 = vmatprep.mubr.bf16.mxu0 %v2969_v47 }
0x151f   : > { %3138 = vmatmul.mubr.bf16.vlgmr.msra.gmra.mrb[24].mxu0 %v2968_v45 }
0x1520   : > { %3873 = vmatprep.mubr.msk.bf16.mxu0 (!%p3565_p5), %vm4101_vm11, %v4100_v12  ;;  %3866 = vmatpush3.bf16.msra.mxu0 (!%p3565_p5), %v4073_v11 }
0x1521   : > { %3867 = vmatprep.subr.bf16.mxu0 (!%p3565_p5), %v4100_v12 }
0x1524   : > { %3868 = vmatpush3.bf16.msra.mxu0 (!%p3565_p5), %v4074_v14 }
0x1525   : > { %3869 = vmatprep.subr.bf16.mxu0 (!%p3565_p5), %v4100_v12 }
0x1528   : > { %3870 = vmatpush3.bf16.msra.mxu0 (!%p3565_p5), %v4075_v15 }
0x1529   : > { %3871 = vmatprep.subr.bf16.mxu0 (!%p3565_p5), %v4100_v12 }
0x152c   : > { %3872 = vmatpush3.bf16.msra.mxu0 (!%p3565_p5), %v4076_v1 }
0x15f2   : > { %v3710_v48 = vpop.f32.mrb[24].mxu0 }
0x15f3   : > { %v3711_v50 = vpop.f32.mrb[25].mxu0 }
0x15f4   : > { %v3712_v56 = vadd.f32 %v3711_v50, %v3710_v48  ;;  %v3713_v51 = vpop.f32.mrb[26].mxu0 }
0x15f5   : > { %v3714_v52 = vpop.f32.mrb[27].mxu0 }
0x15f6   : > { %v3140_v53 = vadd.f32 %v3712_v56, %v3548_v49  ;;  %v3715_v9 = vadd.f32 %v3714_v52, %v3713_v51  ;;  %3153 = sbr.rel (%p3565_p5) target bundleno = 6170 (0x181a), region = 104 }
0x15f8   : > { %v3146_v18 = vadd.f32 %v3140_v53, %v4695_v5  ;;  %v3143_v54 = vadd.f32 %v3715_v9, %v3548_v49 }
0x15fa   : > { %3148 = vst.msk [vmem:[#allocation2] sm:$0xff] %vm1324_vm2, %v3146_v18  ;;  %v3147_v60 = vadd.f32 %v3143_v54, %v4697_v6 }
0x15fc   : > { %3149 = vst.msk [vmem:[#allocation2 + $0x8] sm:$0x3] %vm1328_vm3, %v3147_v60 }
0x1601   : > { %v3154_v10 = vld [vmem:[#allocation2] sm:$0xff] }
0x1602   : > { %v3158_v13 = vsel %vm1324_vm2, %v3154_v10, 0.0 }
0x1603   : > { %v3155_v62 = vld [vmem:[#allocation2 + $0x8] sm:$0x3]  ;;  %3159 = vadd.xlane.f32.xlu0 %v3158_v13 }
0x1604   : > { %v3161_v58 = vsel %vm1328_vm3, %v3155_v62, 0.0 }
0x1607   : > { %3162 = vadd.xlane.f32.xlu0 %v3161_v58 }
0x1690   : > { %v3160_v63 = vpop.xlane.xlu0 %3159 }
0x1691   : > { %v3164_v5 = vmul.f32 0.015625, %v3160_v63 }
0x1693   : > { %v3166_v0 = vsub.f32 %v3154_v10, %v3164_v5 }
0x1694   : > { %v3163_v2 = vpop.xlane.xlu0 %3162 }
0x1695   : > { %v3165_v3 = vmul.f32 0.015625, %v3163_v2  ;;  %v3168_v17 = vmul.f32 %v3166_v0, %v3166_v0 }
0x1697   : > { %v3167_v6 = vsub.f32 %v3155_v62, %v3165_v3  ;;  %v3170_v26 = vsel %vm1324_vm2, %v3168_v17, 0.0 }
0x1698   : > { %3171 = vadd.xlane.f32.xlu1 %v3170_v26 }
0x1699   : > { %v3169_v7 = vmul.f32 %v3167_v6, %v3167_v6 }
0x169b   : > { %v3173_v8 = vsel %vm1328_vm3, %v3169_v7, 0.0 }
0x169c   : > { %3174 = vadd.xlane.f32.xlu1 %v3173_v8 }
0x1725   : > { %v3172_v16 = vpop.xlane.xlu1 %3171 }
0x1726   : > { %v3176_v19 = vmul.f32 0.015625, %v3172_v16 }
0x1728   : > { %v3178_v20 = vadd.f32 1e-05, %v3176_v19 }
0x1729   : > { %v3175_v21 = vpop.xlane.xlu1 %3174 }
0x172a   : > { %4077 = vrsqrt.f32 %v3178_v20  ;;  %v3177_v59 = vmul.f32 0.015625, %v3175_v21 }
0x172c   : > { %v3179_v30 = vadd.f32 1e-05, %v3177_v59 }
0x172e   : > { %4079 = vrsqrt.f32 %v3179_v30 }
0x1734   : > { %v4078_v57 = vpop.eup %4077 }
0x1735   : > { %v3182_v61 = vmul.f32 %v4078_v57, %v3166_v0 }
0x1737   : > { %v3190_v24 = vmul.f32 %v3566_v22, %v3182_v61 }
0x1738   : > { %v4080_v23 = vpop.eup %4079 }
0x1739   : > { %v3183_v46 = vmul.f32 %v4080_v23, %v3167_v6  ;;  %v3198_v27 = vadd.f32 %v3567_v4, %v3190_v24 }
0x173b   : > { %v3191_v25 = vmul.f32 %v3566_v22, %v3183_v46 }
0x173d   : > { %v3199_v28 = vadd.f32 %v3567_v4, %v3191_v25 }
0x173f   : > { %v3200_v29 = vpack.c.bf16 %v3199_v28, %v3198_v27 }
0x1741   : > { %3874 = vmatmul.mubr.msk.bf16.vlgmr.msra.gmra.mrb[0].mxu0 %vm1324_vm2, %v3200_v29 }
0x1814   : > { %v3277_v32 = vpop.f32.mrb[0].mxu0 }
0x1815   : > { %v3278_v33 = vadd.f32 %v3568_v31, %v3277_v32  ;;  %v3875_v34 = vpop.f32.mrb[1].mxu0 }
0x1816   : > { %v3280_v55 = vpop.f32.mrb[2].mxu0 }
0x1817   : > { %3284 = vst [vmem:[%s4845_s20] sm:$0xff] %v3278_v33  ;;  %v3281_v35 = vadd.f32 %v3568_v31, %v3280_v55  ;;  %v3876_v36 = vpop.f32.mrb[3].mxu0 }
0x1819   : > { %3285 = vst [vmem:[%s4845_s20 + $0x8] sm:$0x3] %v3281_v35 }
0x181a PF: > { %s4846_s27 = sld [smem:[#allocation3_spill]] }
0x1820   : > { %s29_s0 = sadd.s32 1, %s4846_s27  }
0x1821   : > { %p26_p6 = scmp.ge.s32.totalorder %s29_s0, 4  }
0x1823   :  { %28 = sbr.rel (!%p26_p6) target bundleno = 12 (0xc), region = 163 }

</bundles_post_ra>
